<compile_context>
chip_gen: v6e
topology: v6e:2x2x1
jax: 0.10.0
libtpu: 0.0.40
codegen_flags: <defaults>
</compile_context>

<pallas_src>
import functools

import jax
import jax.numpy as jnp
from jax.experimental import pallas as pl
from jax.experimental.pallas import tpu as pltpu


def _conv3d_lrelu_kernel(x_ref, w_ref, o_ref, xpad_ref, *, negative_slope):
    # x_ref:    (1, D, H, W*Cin)       un-padded, lane-folded input tile (bf16)
    # w_ref:    (3, 3, W*Cin, WCoutP)  banded weights (kw + Cin folded into K,
    #                                  W-padding absorbed, Cout lane-padded)
    # o_ref:    (1, D*H, WCoutP)       lane-dense output tile (bf16)
    # xpad_ref: (D+2, H+2, W*Cin)      VMEM scratch: zero-padded copy of tile
    _, d, h, wcin = x_ref.shape
    wcoutp = o_ref.shape[-1]

    # --- in-kernel padding (review item 1): zero-fill + interior copy -------
    xpad_ref[...] = jnp.zeros_like(xpad_ref)
    xpad_ref[1:d + 1, 1:h + 1, :] = x_ref[0]

    xpad = xpad_ref[...]                                   # (D+2, H+2, W*Cin)

    # --- 9 banded MXU matmuls: K = W*Cin, M = D*H, N = WCoutP ---------------
    acc = jnp.zeros((d * h, wcoutp), dtype=jnp.float32)
    for kh in range(3):
        x_kh = xpad[:, kh:kh + h, :]                       # (D+2, H, W*Cin)
        for kd in range(3):
            lhs = x_kh[kd:kd + d].reshape(d * h, wcin)     # free leading slice
            acc = acc + jnp.dot(lhs, w_ref[kd, kh],
                                preferred_element_type=jnp.float32)

    # LeakyReLU epilogue in f32, dense full-lane store (128-multiple lanes).
    y = jnp.where(acc >= 0, acc, negative_slope * acc)
    o_ref[0] = y.astype(o_ref.dtype)


def conv_block_forward(x_ncdhw, weight_oikkk, negative_slope=0.1,
                       compute_dtype=jnp.bfloat16):
    """ConvBlock forward.

    x_ncdhw:      (N, Cin, D, H, W)      -- PyTorch Conv3d input layout
    weight_oikkk: (Cout, Cin, 3, 3, 3)   -- PyTorch Conv3d weight layout
    returns:      (N, Cout, D, H, W)
    """
    N, Cin, D, H, W = x_ncdhw.shape
    Cout = weight_oikkk.shape[0]
    WCin = W * Cin
    WCout = W * Cout
    WCoutP = ((WCout + 127) // 128) * 128          # lane-dense output columns
    Dp, Hp = D + 2, H + 2
    out_dtype = x_ncdhw.dtype

    # ---- single input-marshaling pass: NCDHW -> (N, D, H, W*Cin) bf16 -------
    x = jnp.transpose(x_ncdhw, (0, 2, 3, 4, 1)).astype(compute_dtype)
    x = x.reshape(N, D, H, WCin)

    # ---- banded weights: kw taps, Cin contraction, W zero-padding and the
    # Cout lane padding all folded into 9 (W*Cin, WCoutP) matrices.
    # WB[kd,kh][p*Cin+ci, w*Cout+co] = weight[co,ci,kd,kh,kw] iff p == w+kw-1.
    wt = jnp.transpose(weight_oikkk, (2, 3, 4, 1, 0)).astype(jnp.float32)  # (3,3,3,Cin,Cout)
    p_idx = jnp.arange(W)[None, :, None]
    w_idx = jnp.arange(W)[None, None, :]
    kw_idx = jnp.arange(3)[:, None, None]
    band = (p_idx == w_idx + kw_idx - 1).astype(jnp.float32)               # (3, W, W)
    wb = jnp.einsum('xpw,dhxio->dhpiwo', band, wt)                          # (3,3,W,Cin,W,Cout)
    wb = wb.reshape(3, 3, WCin, WCout)
    if WCoutP != WCout:
        wb = jnp.pad(wb, ((0, 0), (0, 0), (0, 0), (0, WCoutP - WCout)))
    wb = wb.astype(compute_dtype)

    kernel = functools.partial(_conv3d_lrelu_kernel,
                               negative_slope=negative_slope)

    # MXU work actually issued (banded K, lane-padded N) -- review item 8.
    flops = 2 * N * 9 * (D * H) * WCin * WCoutP
    bytes_accessed = (x.size * x.dtype.itemsize
                      + wb.size * wb.dtype.itemsize
                      + N * D * H * WCoutP * jnp.dtype(compute_dtype).itemsize)

    out = pl.pallas_call(
        kernel,
        out_shape=jax.ShapeDtypeStruct((N, D * H, WCoutP), compute_dtype),
        grid=(N,),
        in_specs=[
            pl.BlockSpec((1, D, H, WCin), lambda n: (n, 0, 0, 0)),
            # Constant block index -> DMA'd once, revisited for free.
            pl.BlockSpec((3, 3, WCin, WCoutP), lambda n: (0, 0, 0, 0)),
        ],
        out_specs=pl.BlockSpec((1, D * H, WCoutP), lambda n: (n, 0, 0)),
        scratch_shapes=[pltpu.VMEM((Dp, Hp, WCin), compute_dtype)],
        compiler_params=pltpu.CompilerParams(
            dimension_semantics=("parallel",),
            # Well under v7x's 64 MiB per-TC VMEM; raise toward 64-96 MiB on
            # v5e/v6e only if larger depth tiles are ever needed.
            vmem_limit_bytes=48 * 1024 * 1024),
        cost_estimate=pl.CostEstimate(flops=flops, transcendentals=0,
                                      bytes_accessed=bytes_accessed),
    )(x, wb)

    # ---- single output-marshaling pass (required anyway for NCDHW): drop the
    # zero lanes, un-fold, transpose back, cast to the caller dtype.
    out = out[:, :, :WCout].reshape(N, D, H, W, Cout)
    return jnp.transpose(out, (0, 4, 1, 2, 3)).astype(out_dtype)


def _reference(x_ncdhw, weight_oikkk, negative_slope=0.1,
               compute_dtype=jnp.bfloat16):
    # Reference with the same operand/output rounding (bf16 operands, f32
    # accumulate, bf16 output) as the kernel path.
    x = x_ncdhw.astype(compute_dtype).astype(jnp.float32)
    w = weight_oikkk.astype(compute_dtype).astype(jnp.float32)
    y = jax.lax.conv_general_dilated(
        x, w,
        window_strides=(1, 1, 1),
        padding=((1, 1), (1, 1), (1, 1)),
        dimension_numbers=("NCDHW", "OIDHW", "NCDHW"),
    )
    y = jnp.where(y >= 0, y, negative_slope * y)
    return y.astype(compute_dtype).astype(jnp.float32)


if __name__ == "__main__":
    key = jax.random.PRNGKey(0)
    kx, kw = jax.random.split(key)

    N, Cin, Cout = 2, 4, 8
    D, H, W = 16, 8, 8

    x = jax.random.normal(kx, (N, Cin, D, H, W), dtype=jnp.float32)
    # Deterministic synthetic weights (no bias: usingbias=False default).
    weight = jax.random.normal(kw, (Cout, Cin, 3, 3, 3), dtype=jnp.float32) * 0.1

    y = jax.jit(conv_block_forward)(x, weight)
    y = jax.block_until_ready(y)

    y_ref = _reference(x, weight, negative_slope=0.1)
    assert y.shape == (N, Cout, D, H, W)
    assert jnp.allclose(y, y_ref, atol=2e-2, rtol=2e-2), "mismatch vs reference"

    print("KERNEL_OK")
</pallas_src>

<mosaic_0001>
module attributes {stable_mosaic.version = 11 : i64} {
  func.func @_conv3d_lrelu_kernel(%arg0: i32, %arg1: memref<1x16x8x32xbf16, #tpu.memory_space<vmem>>, %arg2: memref<3x3x32x128xbf16, #tpu.memory_space<vmem>>, %arg3: memref<1x128x128xbf16, #tpu.memory_space<vmem>>, %arg4: memref<18x10x32xbf16, #tpu.memory_space<vmem>>) attributes {dimension_semantics = [#tpu.dimension_semantics<parallel>], iteration_bounds = array<i64: 2>, scalar_prefetch = 0 : i64, scratch_operands = 1 : i64, tpu.core_type = #tpu.core_type<tc>, window_params = [{transform_indices = @transform_0, window_bounds = array<i64: 1, 16, 8, 32>}, {pipeline_mode = #tpu.pipeline_mode<synchronous>, transform_indices = @transform_1, window_bounds = array<i64: 3, 3, 32, 128>}, {transform_indices = @transform_2, window_bounds = array<i64: 1, 128, 128>}]} {
    %cst = arith.constant 0.000000e+00 : bf16
    %0 = vector.broadcast %cst : bf16 to vector<18x10x32xbf16>
    %c0 = arith.constant 0 : index
    %c0_0 = arith.constant 0 : index
    %c0_1 = arith.constant 0 : index
    %1 = vector.load %arg4[%c0, %c0_0, %c0_1] : memref<18x10x32xbf16, #tpu.memory_space<vmem>>, vector<18x10x32xbf16>
    tpu.vector_store %arg4[%c0, %c0_0, %c0_1], %0 {strides = array<i32>} : memref<18x10x32xbf16, #tpu.memory_space<vmem>>, vector<18x10x32xbf16>,
    %c0_2 = arith.constant 0 : index
    %c0_3 = arith.constant 0 : index
    %c0_4 = arith.constant 0 : index
    %c0_5 = arith.constant 0 : index
    %2 = vector.load %arg1[%c0_2, %c0_3, %c0_4, %c0_5] : memref<1x16x8x32xbf16, #tpu.memory_space<vmem>>, vector<1x16x8x32xbf16>
    %3 = vector.shape_cast %2 : vector<1x16x8x32xbf16> to vector<16x8x32xbf16>
    %c1 = arith.constant 1 : index
    %c1_6 = arith.constant 1 : index
    %c0_7 = arith.constant 0 : index
    %4 = vector.load %arg4[%c1, %c1_6, %c0_7] : memref<18x10x32xbf16, #tpu.memory_space<vmem>>, vector<16x8x32xbf16>
    tpu.vector_store %arg4[%c1, %c1_6, %c0_7], %3 {strides = array<i32>} : memref<18x10x32xbf16, #tpu.memory_space<vmem>>, vector<16x8x32xbf16>,
    %c0_8 = arith.constant 0 : index
    %c0_9 = arith.constant 0 : index
    %c0_10 = arith.constant 0 : index
    %5 = vector.load %arg4[%c0_8, %c0_9, %c0_10] : memref<18x10x32xbf16, #tpu.memory_space<vmem>>, vector<18x10x32xbf16>
    %cst_11 = arith.constant 0.000000e+00 : f32
    %6 = vector.broadcast %cst_11 : f32 to vector<128x128xf32>
    %7 = vector.extract_strided_slice %5 {offsets = [0, 0, 0], sizes = [18, 8, 32], strides = [1, 1, 1]} : vector<18x10x32xbf16> to vector<18x8x32xbf16>
    %8 = vector.extract_strided_slice %7 {offsets = [0, 0, 0], sizes = [16, 8, 32], strides = [1, 1, 1]} : vector<18x8x32xbf16> to vector<16x8x32xbf16>
    %9 = vector.shape_cast %8 : vector<16x8x32xbf16> to vector<128x32xbf16>
    %c0_12 = arith.constant 0 : index
    %c0_13 = arith.constant 0 : index
    %c0_14 = arith.constant 0 : index
    %c0_15 = arith.constant 0 : index
    %10 = vector.load %arg2[%c0_12, %c0_13, %c0_14, %c0_15] : memref<3x3x32x128xbf16, #tpu.memory_space<vmem>>, vector<1x1x32x128xbf16>
    %11 = vector.shape_cast %10 : vector<1x1x32x128xbf16> to vector<32x128xbf16>
    %cst_16 = arith.constant dense<0.000000e+00> : vector<128x128xf32>
    %12 = tpu.matmul %9, %11, %cst_16 {dimension_numbers = #tpu.dot_dimension_numbers<[1], [0], [0], [1], [0, 0, 1, 1], [], []>} : vector<128x32xbf16>, vector<32x128xbf16>, vector<128x128xf32> -> vector<128x128xf32>
    %13 = arith.addf %6, %12 : vector<128x128xf32>
    %14 = vector.extract_strided_slice %7 {offsets = [1, 0, 0], sizes = [16, 8, 32], strides = [1, 1, 1]} : vector<18x8x32xbf16> to vector<16x8x32xbf16>
    %15 = vector.shape_cast %14 : vector<16x8x32xbf16> to vector<128x32xbf16>
    %c1_17 = arith.constant 1 : index
    %c0_18 = arith.constant 0 : index
    %c0_19 = arith.constant 0 : index
    %c0_20 = arith.constant 0 : index
    %16 = vector.load %arg2[%c1_17, %c0_18, %c0_19, %c0_20] : memref<3x3x32x128xbf16, #tpu.memory_space<vmem>>, vector<1x1x32x128xbf16>
    %17 = vector.shape_cast %16 : vector<1x1x32x128xbf16> to vector<32x128xbf16>
    %cst_21 = arith.constant dense<0.000000e+00> : vector<128x128xf32>
    %18 = tpu.matmul %15, %17, %cst_21 {dimension_numbers = #tpu.dot_dimension_numbers<[1], [0], [0], [1], [0, 0, 1, 1], [], []>} : vector<128x32xbf16>, vector<32x128xbf16>, vector<128x128xf32> -> vector<128x128xf32>
    %19 = arith.addf %13, %18 : vector<128x128xf32>
    %20 = vector.extract_strided_slice %7 {offsets = [2, 0, 0], sizes = [16, 8, 32], strides = [1, 1, 1]} : vector<18x8x32xbf16> to vector<16x8x32xbf16>
    %21 = vector.shape_cast %20 : vector<16x8x32xbf16> to vector<128x32xbf16>
    %c2 = arith.constant 2 : index
    %c0_22 = arith.constant 0 : index
    %c0_23 = arith.constant 0 : index
    %c0_24 = arith.constant 0 : index
    %22 = vector.load %arg2[%c2, %c0_22, %c0_23, %c0_24] : memref<3x3x32x128xbf16, #tpu.memory_space<vmem>>, vector<1x1x32x128xbf16>
    %23 = vector.shape_cast %22 : vector<1x1x32x128xbf16> to vector<32x128xbf16>
    %cst_25 = arith.constant dense<0.000000e+00> : vector<128x128xf32>
    %24 = tpu.matmul %21, %23, %cst_25 {dimension_numbers = #tpu.dot_dimension_numbers<[1], [0], [0], [1], [0, 0, 1, 1], [], []>} : vector<128x32xbf16>, vector<32x128xbf16>, vector<128x128xf32> -> vector<128x128xf32>
    %25 = arith.addf %19, %24 : vector<128x128xf32>
    %26 = vector.extract_strided_slice %5 {offsets = [0, 1, 0], sizes = [18, 8, 32], strides = [1, 1, 1]} : vector<18x10x32xbf16> to vector<18x8x32xbf16>
    %27 = vector.extract_strided_slice %26 {offsets = [0, 0, 0], sizes = [16, 8, 32], strides = [1, 1, 1]} : vector<18x8x32xbf16> to vector<16x8x32xbf16>
    %28 = vector.shape_cast %27 : vector<16x8x32xbf16> to vector<128x32xbf16>
    %c0_26 = arith.constant 0 : index
    %c1_27 = arith.constant 1 : index
    %c0_28 = arith.constant 0 : index
    %c0_29 = arith.constant 0 : index
    %29 = vector.load %arg2[%c0_26, %c1_27, %c0_28, %c0_29] : memref<3x3x32x128xbf16, #tpu.memory_space<vmem>>, vector<1x1x32x128xbf16>
    %30 = vector.shape_cast %29 : vector<1x1x32x128xbf16> to vector<32x128xbf16>
    %cst_30 = arith.constant dense<0.000000e+00> : vector<128x128xf32>
    %31 = tpu.matmul %28, %30, %cst_30 {dimension_numbers = #tpu.dot_dimension_numbers<[1], [0], [0], [1], [0, 0, 1, 1], [], []>} : vector<128x32xbf16>, vector<32x128xbf16>, vector<128x128xf32> -> vector<128x128xf32>
    %32 = arith.addf %25, %31 : vector<128x128xf32>
    %33 = vector.extract_strided_slice %26 {offsets = [1, 0, 0], sizes = [16, 8, 32], strides = [1, 1, 1]} : vector<18x8x32xbf16> to vector<16x8x32xbf16>
    %34 = vector.shape_cast %33 : vector<16x8x32xbf16> to vector<128x32xbf16>
    %c1_31 = arith.constant 1 : index
    %c1_32 = arith.constant 1 : index
    %c0_33 = arith.constant 0 : index
    %c0_34 = arith.constant 0 : index
    %35 = vector.load %arg2[%c1_31, %c1_32, %c0_33, %c0_34] : memref<3x3x32x128xbf16, #tpu.memory_space<vmem>>, vector<1x1x32x128xbf16>
    %36 = vector.shape_cast %35 : vector<1x1x32x128xbf16> to vector<32x128xbf16>
    %cst_35 = arith.constant dense<0.000000e+00> : vector<128x128xf32>
    %37 = tpu.matmul %34, %36, %cst_35 {dimension_numbers = #tpu.dot_dimension_numbers<[1], [0], [0], [1], [0, 0, 1, 1], [], []>} : vector<128x32xbf16>, vector<32x128xbf16>, vector<128x128xf32> -> vector<128x128xf32>
    %38 = arith.addf %32, %37 : vector<128x128xf32>
    %39 = vector.extract_strided_slice %26 {offsets = [2, 0, 0], sizes = [16, 8, 32], strides = [1, 1, 1]} : vector<18x8x32xbf16> to vector<16x8x32xbf16>
    %40 = vector.shape_cast %39 : vector<16x8x32xbf16> to vector<128x32xbf16>
    %c2_36 = arith.constant 2 : index
    %c1_37 = arith.constant 1 : index
    %c0_38 = arith.constant 0 : index
    %c0_39 = arith.constant 0 : index
    %41 = vector.load %arg2[%c2_36, %c1_37, %c0_38, %c0_39] : memref<3x3x32x128xbf16, #tpu.memory_space<vmem>>, vector<1x1x32x128xbf16>
    %42 = vector.shape_cast %41 : vector<1x1x32x128xbf16> to vector<32x128xbf16>
    %cst_40 = arith.constant dense<0.000000e+00> : vector<128x128xf32>
    %43 = tpu.matmul %40, %42, %cst_40 {dimension_numbers = #tpu.dot_dimension_numbers<[1], [0], [0], [1], [0, 0, 1, 1], [], []>} : vector<128x32xbf16>, vector<32x128xbf16>, vector<128x128xf32> -> vector<128x128xf32>
    %44 = arith.addf %38, %43 : vector<128x128xf32>
    %45 = vector.extract_strided_slice %5 {offsets = [0, 2, 0], sizes = [18, 8, 32], strides = [1, 1, 1]} : vector<18x10x32xbf16> to vector<18x8x32xbf16>
    %46 = vector.extract_strided_slice %45 {offsets = [0, 0, 0], sizes = [16, 8, 32], strides = [1, 1, 1]} : vector<18x8x32xbf16> to vector<16x8x32xbf16>
    %47 = vector.shape_cast %46 : vector<16x8x32xbf16> to vector<128x32xbf16>
    %c0_41 = arith.constant 0 : index
    %c2_42 = arith.constant 2 : index
    %c0_43 = arith.constant 0 : index
    %c0_44 = arith.constant 0 : index
    %48 = vector.load %arg2[%c0_41, %c2_42, %c0_43, %c0_44] : memref<3x3x32x128xbf16, #tpu.memory_space<vmem>>, vector<1x1x32x128xbf16>
    %49 = vector.shape_cast %48 : vector<1x1x32x128xbf16> to vector<32x128xbf16>
    %cst_45 = arith.constant dense<0.000000e+00> : vector<128x128xf32>
    %50 = tpu.matmul %47, %49, %cst_45 {dimension_numbers = #tpu.dot_dimension_numbers<[1], [0], [0], [1], [0, 0, 1, 1], [], []>} : vector<128x32xbf16>, vector<32x128xbf16>, vector<128x128xf32> -> vector<128x128xf32>
    %51 = arith.addf %44, %50 : vector<128x128xf32>
    %52 = vector.extract_strided_slice %45 {offsets = [1, 0, 0], sizes = [16, 8, 32], strides = [1, 1, 1]} : vector<18x8x32xbf16> to vector<16x8x32xbf16>
    %53 = vector.shape_cast %52 : vector<16x8x32xbf16> to vector<128x32xbf16>
    %c1_46 = arith.constant 1 : index
    %c2_47 = arith.constant 2 : index
    %c0_48 = arith.constant 0 : index
    %c0_49 = arith.constant 0 : index
    %54 = vector.load %arg2[%c1_46, %c2_47, %c0_48, %c0_49] : memref<3x3x32x128xbf16, #tpu.memory_space<vmem>>, vector<1x1x32x128xbf16>
    %55 = vector.shape_cast %54 : vector<1x1x32x128xbf16> to vector<32x128xbf16>
    %cst_50 = arith.constant dense<0.000000e+00> : vector<128x128xf32>
    %56 = tpu.matmul %53, %55, %cst_50 {dimension_numbers = #tpu.dot_dimension_numbers<[1], [0], [0], [1], [0, 0, 1, 1], [], []>} : vector<128x32xbf16>, vector<32x128xbf16>, vector<128x128xf32> -> vector<128x128xf32>
    %57 = arith.addf %51, %56 : vector<128x128xf32>
    %58 = vector.extract_strided_slice %45 {offsets = [2, 0, 0], sizes = [16, 8, 32], strides = [1, 1, 1]} : vector<18x8x32xbf16> to vector<16x8x32xbf16>
    %59 = vector.shape_cast %58 : vector<16x8x32xbf16> to vector<128x32xbf16>
    %c2_51 = arith.constant 2 : index
    %c2_52 = arith.constant 2 : index
    %c0_53 = arith.constant 0 : index
    %c0_54 = arith.constant 0 : index
    %60 = vector.load %arg2[%c2_51, %c2_52, %c0_53, %c0_54] : memref<3x3x32x128xbf16, #tpu.memory_space<vmem>>, vector<1x1x32x128xbf16>
    %61 = vector.shape_cast %60 : vector<1x1x32x128xbf16> to vector<32x128xbf16>
    %cst_55 = arith.constant dense<0.000000e+00> : vector<128x128xf32>
    %62 = tpu.matmul %59, %61, %cst_55 {dimension_numbers = #tpu.dot_dimension_numbers<[1], [0], [0], [1], [0, 0, 1, 1], [], []>} : vector<128x32xbf16>, vector<32x128xbf16>, vector<128x128xf32> -> vector<128x128xf32>
    %63 = arith.addf %57, %62 : vector<128x128xf32>
    %cst_56 = arith.constant 0.000000e+00 : f32
    %64 = vector.broadcast %cst_56 : f32 to vector<128x128xf32>
    %65 = arith.cmpf oge, %63, %64 : vector<128x128xf32>
    %cst_57 = arith.constant 1.000000e-01 : f32
    %66 = vector.broadcast %cst_57 : f32 to vector<128x128xf32>
    %67 = arith.mulf %66, %63 : vector<128x128xf32>
    %68 = arith.select %65, %63, %67 : vector<128x128xi1>, vector<128x128xf32>
    %69 = arith.truncf %68 : vector<128x128xf32> to vector<128x128xbf16>
    %c0_58 = arith.constant 0 : index
    %c0_59 = arith.constant 0 : index
    %c0_60 = arith.constant 0 : index
    %70 = vector.load %arg3[%c0_58, %c0_59, %c0_60] : memref<1x128x128xbf16, #tpu.memory_space<vmem>>, vector<1x128x128xbf16>
    %71 = vector.shape_cast %70 : vector<1x128x128xbf16> to vector<128x128xbf16>
    %72 = vector.shape_cast %69 : vector<128x128xbf16> to vector<1x128x128xbf16>
    tpu.vector_store %arg3[%c0_58, %c0_59, %c0_60], %72 {strides = array<i32>} : memref<1x128x128xbf16, #tpu.memory_space<vmem>>, vector<1x128x128xbf16>,
    return
  }
  func.func @transform_0(%arg0: i32) -> (i32, i32, i32, i32) {
    %c0_i32 = arith.constant 0 : i32
    %c0_i32_0 = arith.constant 0 : i32
    %c0_i32_1 = arith.constant 0 : i32
    %c0_i32_2 = arith.constant 0 : i32
    return %arg0, %c0_i32, %c0_i32_0, %c0_i32_1 : i32, i32, i32, i32
  }
  func.func @transform_1(%arg0: i32) -> (i32, i32, i32, i32) {
    %c0_i32 = arith.constant 0 : i32
    %c0_i32_0 = arith.constant 0 : i32
    %c0_i32_1 = arith.constant 0 : i32
    %c0_i32_2 = arith.constant 0 : i32
    %c0_i32_3 = arith.constant 0 : i32
    return %c0_i32, %c0_i32_0, %c0_i32_1, %c0_i32_2 : i32, i32, i32, i32
  }
  func.func @transform_2(%arg0: i32) -> (i32, i32, i32) {
    %c0_i32 = arith.constant 0 : i32
    %c0_i32_0 = arith.constant 0 : i32
    %c0_i32_1 = arith.constant 0 : i32
    return %arg0, %c0_i32, %c0_i32_0 : i32, i32, i32
  }
}

</mosaic_0001>

<bundles_post_ra>
// kernel: conv_block_forward.1
= control target key start
LH: loop header
LB: loop body
LE: loop exit
PB: predicated region body
PF: predicated region fallthrough
CT: control target
= control target key end

     0   :  { %s3061_s9 = smov 0   ;;  %s4177_s0 = inlined_call_operand.vmem [shape: bf16[2,16,8,32], index: 0, kind: input, shape index: {}]   ;;  %s4178_s1 = inlined_call_operand.vmem [shape: bf16[3,3,32,128], index: 1, kind: input, shape index: {}]   ;;  %s4179_s2 = inlined_call_operand.vmem [shape: bf16[2,128,128], index: 2, kind: output, shape index: {}]  }
   0x1 LB: > { %s2443_s10 = sadd.s32 4294967295, %s3043_s9   ;;  %p2447_p0 = scmp.ge.s32.totalorder %s3043_s9, 1  ;;  %s3043_s9 = sphi %s3061_s9, %s12_s9  }
   0x2   : > { %p112_p1 = scmp.lt.s32.totalorder %s3043_s9, 3 }
   0x4   : > { %p113_p2 = pnand %p2447_p0, %p112_p1 }
   0x6   : > { %116 = sbr.rel (%p113_p2) target bundleno = 405 (0x195), region = 28 }
   0xb   : > { %v3009_v0 = vld [vmem:[%s4178_s1 + $0x38] sm:$0xff]   ;;  %p134_p3 = scmp.lt.s32.totalorder %s2443_s10, 1  ;;  %v3010_v1 = vld [vmem:[%s4178_s1 + $0x30] sm:$0xff]   ;;  %vm145_vm0 = vcmask 257024   ;;  %v3045_v2 = vmov 0   ;;  %v3098_v3 = vld [vmem:[%s4178_s1 + $0x8] sm:$0xff]  }
   0xc   : > { %2996 = vmatprep.subr.bf16.mxu1 %v3009_v0  ;;  %2816 = vmatprep.subr.bf16.mxu0 %v3009_v0  ;;  %149 = vst.msk [vmem:[#allocation2 + $0x8] sm:$0xf] %vm145_vm0, %v3045_v2  ;;  %151 = vst.msk [vmem:[#allocation2 + $0x10] sm:$0xf] %vm145_vm0, %v3045_v2  ;;  %vm147_vm1 = vcmask 253952   ;;  %v3104_v4 = vld [vmem:[%s4178_s1 + $0x68] sm:$0xff]  }
   0xd   : > { %s4271_s10 = smov (!%p134_p3, %s2443_s10), 1  ;;  %2998 = vmatpush3.bf16.msra.mxu1 %v3009_v0  ;;  %2817 = vmatpush3.bf16.msra.mxu0 %v3009_v0  ;;  %146 = vst.msk [vmem:[#allocation2] sm:$0xf] %vm145_vm0, %v3045_v2  ;;  %153 = vst.msk [vmem:[#allocation2 + $0x18] sm:$0xf] %vm145_vm0, %v3045_v2  ;;  %vm559_vm4 = vcmask 261120  }
   0xe   : > { %155 = vst.msk [vmem:[#allocation2 + $0x20] sm:$0xf] %vm145_vm0, %v3045_v2  ;;  %157 = vst.msk [vmem:[#allocation2 + $0x28] sm:$0xf] %vm145_vm0, %v3045_v2  ;;  %2997 = vmatprep.subr.bf16.mxu1 %v3010_v1  ;;  %2818 = vmatprep.subr.bf16.mxu0 %v3010_v1  ;;  %s2661_s17 = sshll.u32 %s4271_s10, 6  ;;  %vm1707_vm10 = vcmask 1042432  }
   0xf   : > { %159 = vst.msk [vmem:[#allocation2 + $0x30] sm:$0xf] %vm145_vm0, %v3045_v2  ;;  %161 = vst.msk [vmem:[#allocation2 + $0x38] sm:$0xf] %vm145_vm0, %v3045_v2  ;;  %s3129_s22 = scalar_lea.vmem %s4177_s0, %s2661_s17  ;;  %vm361_vm2 = vsmask.f32 7938  ;;  %s4143_s28 = scalar_lea.vmem %s4179_s2, %s2661_s17 }
  0x10   : > { %163 = vst.msk [vmem:[#allocation2 + $0x40] sm:$0xf] %vm145_vm0, %v3045_v2  ;;  %165 = vst.msk [vmem:[#allocation2 + $0x48] sm:$0xf] %vm145_vm0, %v3045_v2  ;;  %v183_v5 = vld [vmem:[%s3129_s22] sm:$0xf] }
  0x11   : > { %167 = vst.msk [vmem:[#allocation2 + $0x50] sm:$0xf] %vm145_vm0, %v3045_v2  ;;  %169 = vst.msk [vmem:[#allocation2 + $0x58] sm:$0xf] %vm145_vm0, %v3045_v2  ;;  %v184_v6 = vld [vmem:[%s3129_s22 + $0x4] sm:$0xf]  ;;  %2999 = vmatpush3.bf16.msra.mxu1 %v3010_v1  ;;  %2819 = vmatpush3.bf16.msra.mxu0 %v3010_v1 }
  0x12   : > { %171 = vst.msk [vmem:[#allocation2 + $0x60] sm:$0xf] %vm145_vm0, %v3045_v2  ;;  %173 = vst.msk [vmem:[#allocation2 + $0x68] sm:$0xf] %vm145_vm0, %v3045_v2  ;;  %v191_v7 = vld [vmem:[%s3129_s22 + $0x20] sm:$0xf]  ;;  %2836 = vmatprep.subr.bf16.mxu1 %v3098_v3  ;;  %2856 = vmatprep.subr.bf16.mxu0 %v3104_v4 }
  0x13   : > { %175 = vst.msk [vmem:[#allocation2 + $0x70] sm:$0xf] %vm145_vm0, %v3045_v2  ;;  %177 = vst.msk [vmem:[#allocation2 + $0x78] sm:$0xf] %vm145_vm0, %v3045_v2  ;;  %v200_v8 = vshrl.u32 %v183_v5, 16  ;;  %v203_v9 = vshll.u32 %v183_v5, 16 }
  0x14   : > { %179 = vst.msk [vmem:[#allocation2 + $0x80] sm:$0xf] %vm145_vm0, %v3045_v2  ;;  %181 = vst.msk [vmem:[#allocation2 + $0x88] sm:$0xf] %vm145_vm0, %v3045_v2  ;;  %v208_v10 = vshrl.u32 %v184_v6, 16  ;;  %v211_v11 = vshll.u32 %v184_v6, 16 }
  0x15   : > { %148 = vst.msk [vmem:[#allocation2 + $0x4] sm:$0x1] %vm147_vm1, %v3045_v2  ;;  %150 = vst.msk [vmem:[#allocation2 + $0xc] sm:$0x1] %vm147_vm1, %v3045_v2  ;;  %v192_v12 = vld [vmem:[%s3129_s22 + $0x24] sm:$0xf] }
  0x16   : > { %152 = vst.msk [vmem:[#allocation2 + $0x14] sm:$0x1] %vm147_vm1, %v3045_v2  ;;  %154 = vst.msk [vmem:[#allocation2 + $0x1c] sm:$0x1] %vm147_vm1, %v3045_v2  ;;  %v264_v13 = vshrl.u32 %v191_v7, 16  ;;  %v267_v14 = vshll.u32 %v191_v7, 16 }
  0x17   : > { %156 = vst.msk [vmem:[#allocation2 + $0x24] sm:$0x1] %vm147_vm1, %v3045_v2  ;;  %158 = vst.msk [vmem:[#allocation2 + $0x2c] sm:$0x1] %vm147_vm1, %v3045_v2  ;;  %v272_v15 = vshrl.u32 %v192_v12, 16  ;;  %v275_v16 = vshll.u32 %v192_v12, 16 }
  0x18   : > { %160 = vst.msk [vmem:[#allocation2 + $0x34] sm:$0x1] %vm147_vm1, %v3045_v2  ;;  %162 = vst.msk [vmem:[#allocation2 + $0x3c] sm:$0x1] %vm147_vm1, %v3045_v2  ;;  %v185_v17 = vld [vmem:[%s3129_s22 + $0x8] sm:$0xf] }
  0x19   : > { %164 = vst.msk [vmem:[#allocation2 + $0x44] sm:$0x1] %vm147_vm1, %v3045_v2  ;;  %166 = vst.msk [vmem:[#allocation2 + $0x4c] sm:$0x1] %vm147_vm1, %v3045_v2  ;;  %v3138_v18 = vrot.slane %v200_v8, 7  ;;  %v3140_v19 = vrot.slane %v208_v10, 7 }
  0x1a   : > { %168 = vst.msk [vmem:[#allocation2 + $0x54] sm:$0x1] %vm147_vm1, %v3045_v2  ;;  %170 = vst.msk [vmem:[#allocation2 + $0x5c] sm:$0x1] %vm147_vm1, %v3045_v2  ;;  %v186_v20 = vld [vmem:[%s3129_s22 + $0xc] sm:$0xf] }
  0x1b   : > { %172 = vst.msk [vmem:[#allocation2 + $0x64] sm:$0x1] %vm147_vm1, %v3045_v2  ;;  %174 = vst.msk [vmem:[#allocation2 + $0x6c] sm:$0x1] %vm147_vm1, %v3045_v2  ;;  %v216_v21 = vshrl.u32 %v185_v17, 16  ;;  %v3149_v25 = vrot.slane %v264_v13, 7  ;;  %v205_v27 = vor.u32 %v203_v9, %v3138_v18  ;;  %v213_v28 = vor.u32 %v211_v11, %v3140_v19 }
  0x1c   : > { %176 = vst.msk [vmem:[#allocation2 + $0x74] sm:$0x1] %vm147_vm1, %v3045_v2  ;;  %178 = vst.msk [vmem:[#allocation2 + $0x7c] sm:$0x1] %vm147_vm1, %v3045_v2  ;;  %v363_v23 = vld [vmem:[#allocation2 + $0x8] sm:$0xf] }
  0x1d   : > { %180 = vst.msk [vmem:[#allocation2 + $0x84] sm:$0x1] %vm147_vm1, %v3045_v2  ;;  %182 = vst.msk [vmem:[#allocation2 + $0x8c] sm:$0x1] %vm147_vm1, %v3045_v2  ;;  %v372_v24 = vld [vmem:[#allocation2 + $0x10] sm:$0xf]  ;;  %v269_v32 = vor.u32 %v267_v14, %v3149_v25 }
  0x1e   : > { %vm3145_vm3 = vmand %vm145_vm0, %vm361_vm2  ;;  %v3151_v26 = vrot.slane %v272_v15, 7  ;;  %v414_v29 = vld [vmem:[#allocation2 + $0x48] sm:$0xf]  ;;  %v420_v30 = vld [vmem:[#allocation2 + $0x50] sm:$0xf]  ;;  %v219_v31 = vshll.u32 %v185_v17, 16 }
  0x1f   : > { %v364_v34 = vsel %vm3145_vm3, %v205_v27, %v363_v23  ;;  %v373_v35 = vsel %vm3145_vm3, %v213_v28, %v372_v24  ;;  %v3161_v36 = vrot.slane %v216_v21, 7  ;;  %v224_v37 = vshrl.u32 %v186_v20, 16  ;;  %v193_v38 = vld [vmem:[%s3129_s22 + $0x28] sm:$0xf]  ;;  %v194_v39 = vld [vmem:[%s3129_s22 + $0x2c] sm:$0xf] }
  0x20   : > { %v277_v33 = vor.u32 %v275_v16, %v3151_v26  ;;  %365 = vst [vmem:[#allocation2 + $0x8] sm:$0xf] %v364_v34  ;;  %374 = vst [vmem:[#allocation2 + $0x10] sm:$0xf] %v373_v35  ;;  %v415_v40 = vsel %vm3145_vm3, %v269_v32, %v414_v29  ;;  %v227_v42 = vshll.u32 %v186_v20, 16  ;;  %v280_v45 = vshrl.u32 %v193_v38, 16 }
  0x21   : > { %v378_v43 = vld [vmem:[#allocation2 + $0x18] sm:$0xf]  ;;  %v384_v44 = vld [vmem:[#allocation2 + $0x20] sm:$0xf]  ;;  %416 = vst [vmem:[#allocation2 + $0x48] sm:$0xf] %v415_v40  ;;  %v221_v46 = vor.u32 %v219_v31, %v3161_v36 }
  0x22   : > { %v421_v41 = vsel %vm3145_vm3, %v277_v33, %v420_v30  ;;  %v3170_v47 = vrot.slane %v224_v37, 7  ;;  %v283_v48 = vshll.u32 %v193_v38, 16  ;;  %v288_v49 = vshrl.u32 %v194_v39, 16  ;;  %v187_v50 = vld [vmem:[%s3129_s22 + $0x10] sm:$0xf]  ;;  %v3451_v29 = vld [vmem:[%s4178_s1 + $0x28] sm:$0xff]  }
  0x23   : > { %422 = vst [vmem:[#allocation2 + $0x50] sm:$0xf] %v421_v41  ;;  %v3173_v51 = vrot.slane %v280_v45, 7  ;;  %v291_v52 = vshll.u32 %v194_v39, 16  ;;  %v188_v53 = vld [vmem:[%s3129_s22 + $0x14] sm:$0xf]  ;;  %v379_v56 = vsel %vm3145_vm3, %v221_v46, %v378_v43 }
  0x24   : > { %v232_v54 = vshrl.u32 %v187_v50, 16  ;;  %v229_v55 = vor.u32 %v227_v42, %v3170_v47  ;;  %v3179_v57 = vrot.slane %v288_v49, 7  ;;  %v426_v58 = vld [vmem:[#allocation2 + $0x58] sm:$0xf]  ;;  %v432_v59 = vld [vmem:[#allocation2 + $0x60] sm:$0xf] }
  0x25   : > { %380 = vst [vmem:[#allocation2 + $0x18] sm:$0xf] %v379_v56  ;;  %v285_v60 = vor.u32 %v283_v48, %v3173_v51  ;;  %v235_v62 = vshll.u32 %v187_v50, 16  ;;  %v240_v63 = vshrl.u32 %v188_v53, 16  ;;  %v195_v0 = vld [vmem:[%s3129_s22 + $0x30] sm:$0xf] }
  0x26   : > { %v3182_v61 = vrot.slane %v232_v54, 7  ;;  %v385_v1 = vsel %vm3145_vm3, %v229_v55, %v384_v44  ;;  %v293_v2 = vor.u32 %v291_v52, %v3179_v57  ;;  %v296_v5 = vshrl.u32 %v195_v0, 16  ;;  %v196_v7 = vld [vmem:[%s3129_s22 + $0x34] sm:$0xf]  ;;  %v390_v17 = vld [vmem:[#allocation2 + $0x28] sm:$0xf] }
  0x27   : > { %386 = vst [vmem:[#allocation2 + $0x20] sm:$0xf] %v385_v1  ;;  %v427_v6 = vsel %vm3145_vm3, %v285_v60, %v426_v58  ;;  %v206_v8 = vrot.slane %v3138_v18, 4  ;;  %v3192_v9 = vld [vmem:[#allocation2 + $0x8] sm:$0xf]  ;;  %v3203_v15 = vrot.slane %v240_v63, 7 }
  0x28   : > { %4192 = vst [vmem:[#allocation3_spill] sm:$0xff] %v3192_v9  ;;  %v3194_v10 = vld [vmem:[#allocation2 + $0x10] sm:$0xf]  ;;  %428 = vst [vmem:[#allocation2 + $0x58] sm:$0xf] %v427_v6  ;;  %v433_v11 = vsel %vm3145_vm3, %v293_v2, %v432_v59  ;;  %v237_v14 = vor.u32 %v235_v62, %v3182_v61  ;;  %v243_v16 = vshll.u32 %v188_v53, 16 }
  0x29   : > { %v2456_v12 = vcombine.low %v3192_v9, %v3194_v10  ;;  %v3200_v13 = vld [vmem:[#allocation2 + $0x48] sm:$0xf]  ;;  %434 = vst [vmem:[#allocation2 + $0x60] sm:$0xf] %v433_v11  ;;  %v214_v20 = vrot.slane %v3140_v19, 4  ;;  %v3208_v23 = vrot.slane %v296_v5, 7 }
  0x2a   : > { %4193 = vst [vmem:[#allocation4_spill] sm:$0xff] %v3200_v13  ;;  %v3206_v21 = vld [vmem:[#allocation2 + $0x50] sm:$0xf]  ;;  %v299_v24 = vshll.u32 %v195_v0, 16  ;;  %v304_v27 = vshrl.u32 %v196_v7, 16  ;;  %v978_v33 = vshrl.u32 %v3192_v9, 16  ;;  %v245_v40 = vor.u32 %v243_v16, %v3203_v15 }
  0x2b   : > { %2820 = vmatprep.mubr.msk.bf16.mxu0 %vm559_vm4, %v2456_v12  ;;  %v2460_v30 = vcombine.low %v3200_v13, %v3206_v21  ;;  %v396_v31 = vld [vmem:[#allocation2 + $0x30] sm:$0xf]  ;;  %v189_v32 = vld [vmem:[%s3129_s22 + $0x18] sm:$0xf]  ;;  %v307_v35 = vshll.u32 %v196_v7, 16  ;;  %v981_v38 = vshll.u32 %v3192_v9, 16  ;;  %v391_v41 = vsel %vm3145_vm3, %v237_v14, %v390_v17 }
  0x2c   : > { %v3217_v34 = vld [vmem:[#allocation2 + $0x18] sm:$0xf]  ;;  %v438_v37 = vld [vmem:[#allocation2 + $0x68] sm:$0xf]  ;;  %v992_v39 = vshrl.u32 %v3194_v10, 16  ;;  %v995_v44 = vshll.u32 %v3194_v10, 16  ;;  %v301_v46 = vor.u32 %v299_v24, %v3208_v23  ;;  %v397_v55 = vsel %vm3145_vm3, %v245_v40, %v396_v31 }
  0x2d   : > { %2828 = vmatprep.mubr.msk.bf16.mxu1 %vm559_vm4, %v2460_v30  ;;  %v444_v42 = vld [vmem:[#allocation2 + $0x70] sm:$0xf]  ;;  %v190_v43 = vld [vmem:[%s3129_s22 + $0x1c] sm:$0xf]  ;;  %392 = vst [vmem:[#allocation2 + $0x28] sm:$0xf] %v391_v41 }
  0x2e   : > { %v3227_v45 = vld [vmem:[#allocation2 + $0x20] sm:$0xf]  ;;  %v3230_v48 = vrot.slane %v304_v27, 7  ;;  %v248_v49 = vshrl.u32 %v189_v32, 16  ;;  %v1090_v52 = vshrl.u32 %v3200_v13, 16  ;;  %v251_v58 = vshll.u32 %v189_v32, 16 }
  0x2f   : > { %4194 = vst [vmem:[#allocation5_spill] sm:$0xff] %v3227_v45  ;;  %v3022_v50 = vld [vmem:[%s4178_s1 + $0x60] sm:$0xff]   ;;  %v2457_v53 = vcombine.low %v3217_v34, %v3227_v45  ;;  %v3238_v54 = vld [vmem:[#allocation2 + $0x58] sm:$0xf]  ;;  %398 = vst [vmem:[#allocation2 + $0x30] sm:$0xf] %v397_v55  ;;  %v439_v63 = vsel %vm3145_vm3, %v301_v46, %v438_v37 }
  0x30   : > { %v3019_v56 = vld [vmem:[%s4178_s1] sm:$0xff]   ;;  %v197_v59 = vld [vmem:[%s3129_s22 + $0x38] sm:$0xf]  ;;  %v309_v62 = vor.u32 %v307_v35, %v3230_v48  ;;  %v3251_v0 = vrot.slane %v248_v49, 7  ;;  %v256_v1 = vshrl.u32 %v190_v43, 16  ;;  %v259_v6 = vshll.u32 %v190_v43, 16 }
  0x31   : > { %v3246_v60 = vld [vmem:[#allocation2 + $0x60] sm:$0xf]  ;;  %v198_v2 = vld [vmem:[%s3129_s22 + $0x3c] sm:$0xf]  ;;  %2821 = vmatmul.mubr.msk.bf16.vlgmr.msra.gmra.mxu0 %vm559_vm4, %v2457_v53  ;;  %440 = vst [vmem:[#allocation2 + $0x68] sm:$0xf] %v439_v63 }
  0x32   : > { %v2461_v5 = vcombine.low %v3238_v54, %v3246_v60  ;;  %v402_v7 = vld [vmem:[#allocation2 + $0x38] sm:$0xf]  ;;  %v312_v11 = vshrl.u32 %v197_v59, 16  ;;  %v315_v12 = vshll.u32 %v197_v59, 16  ;;  %v3260_v14 = vld [vmem:[%s4178_s1 + $0x48] sm:$0xff]   ;;  %2857 = vmatpush3.bf16.msra.mxu0 %v3104_v4  ;;  %v445_v16 = vsel %vm3145_vm3, %v309_v62, %v444_v42 }
  0x33   : > { %v253_v17 = vor.u32 %v251_v58, %v3251_v0  ;;  %v3266_v24 = vrot.slane %v256_v1, 7  ;;  %v408_v27 = vld [vmem:[#allocation2 + $0x40] sm:$0xf]  ;;  %v320_v30 = vshrl.u32 %v198_v2, 16  ;;  %446 = vst [vmem:[#allocation2 + $0x70] sm:$0xf] %v445_v16  ;;  %2858 = vmatprep.subr.bf16.mxu0 %v3022_v50 }
  0x34   : > { %2829 = vmatmul.mubr.msk.bf16.vlgmr.msra.gmra.mxu1 %vm559_vm4, %v2461_v5  ;;  %v3269_v31 = vrot.slane %v312_v11, 7  ;;  %v323_v32 = vshll.u32 %v198_v2, 16  ;;  %v450_v35 = vld [vmem:[#allocation2 + $0x78] sm:$0xf]  ;;  %v1093_v37 = vshll.u32 %v3200_v13, 16  ;;  %v230_v59 = vrot.slane %v3170_v47, 4 }
  0x35   : > { %v3274_v4 = vld [vmem:[%s4178_s1 + $0x18] sm:$0xff]   ;;  %2837 = vmatpush3.bf16.msra.mxu1 %v3098_v3  ;;  %v261_v40 = vor.u32 %v259_v6, %v3266_v24  ;;  %v403_v41 = vsel %vm3145_vm3, %v253_v17, %v402_v7  ;;  %v3281_v42 = vrot.slane %v320_v30, 7  ;;  %v3283_v43 = vld [vmem:[#allocation2 + $0x28] sm:$0xf]  ;;  %v456_v49 = vld [vmem:[#allocation2 + $0x80] sm:$0xf] }
  0x36   : > { %4195 = vst [vmem:[#allocation6_spill] sm:$0xff] %v3283_v43  ;;  %2838 = vmatprep.subr.bf16.mxu1 %v3019_v56  ;;  %404 = vst [vmem:[#allocation2 + $0x38] sm:$0xf] %v403_v41  ;;  %v317_v46 = vor.u32 %v315_v12, %v3269_v31  ;;  %2859 = vmatpush3.bf16.msra.mxu0 %v3022_v50  ;;  %v3289_v3 = vld [vmem:[#allocation2 + $0x30] sm:$0xf]  ;;  %v3303_v50 = vrot.slane %v978_v33, 4 }
  0x37   : > { %v409_v53 = vsel %vm3145_vm3, %v261_v40, %v408_v27  ;;  %v325_v55 = vor.u32 %v323_v32, %v3281_v42  ;;  %4196 = vst [vmem:[#allocation7_spill] sm:$0xff] %v3289_v3  ;;  %2896 = vmatprep.subr.bf16.mxu0 %v3260_v14  ;;  %v2458_v62 = vcombine.low %v3283_v43, %v3289_v3  ;;  %vm367_vm5 = vsmask.f32 256  ;;  %v369_v33 = vld [vmem:[#allocation2 + $0xc] sm:$0x1] }
  0x38   : > { %410 = vst [vmem:[#allocation2 + $0x40] sm:$0xf] %v409_v53  ;;  %v451_v58 = vsel %vm3145_vm3, %v317_v46, %v450_v35  ;;  %v3297_v63 = vld [vmem:[#allocation2 + $0x68] sm:$0xf]  ;;  %v3307_v2 = vrot.slane %v981_v38, 5  ;;  %v3311_v47 = vrot.slane %v992_v39, 4  ;;  %vm3316_vm6 = vmand %vm147_vm1, %vm367_vm5 }
  0x39   : > { %452 = vst [vmem:[#allocation2 + $0x78] sm:$0xf] %v451_v58  ;;  %v457_v1 = vsel %vm3145_vm3, %v325_v55, %v456_v49  ;;  %2839 = vmatpush3.bf16.msra.mxu1 %v3019_v56  ;;  %v3322_v56 = vrot.slane %v995_v44, 5  ;;  %v3326_v38 = vrot.slane %v1090_v52, 4  ;;  %v3328_v39 = vrot.slane %v1093_v37, 5  ;;  %2824 = vmatprep.mubr.msk.bf16.mxu0 %vm559_vm4, %v2458_v62 }
  0x3a   : > { %458 = vst [vmem:[#allocation2 + $0x80] sm:$0xf] %v457_v1  ;;  %2876 = vmatprep.subr.bf16.mxu1 %v3274_v4  ;;  %v3331_v6 = vld [vmem:[#allocation2 + $0x70] sm:$0xf]  ;;  %v370_v7 = vsel %vm3316_vm6, %v206_v8, %v369_v33  ;;  %v1104_v11 = vshrl.u32 %v3206_v21, 16  ;;  %v1107_v44 = vshll.u32 %v3206_v21, 16  ;;  %v3356_v37 = vcombine.low %v3194_v10, %v3217_v34 }
  0x3b   : > { %v2462_v12 = vcombine.low %v3297_v63, %v3331_v6  ;;  %v3341_v52 = vld [vmem:[#allocation2] sm:$0xf]  ;;  %371 = vst [vmem:[#allocation2 + $0xc] sm:$0x1] %v370_v7  ;;  %v375_v16 = vld [vmem:[#allocation2 + $0x14] sm:$0x1] }
  0x3c   : > { %4199 = vst [vmem:[#allocation8_spill] sm:$0xff] %v3341_v52  ;;  %v222_v18 = vrot.slane %v3161_v36, 4  ;;  %v376_v8 = vsel %vm3316_vm6, %v214_v20, %v375_v16  ;;  %v381_v30 = vld [vmem:[#allocation2 + $0x1c] sm:$0x1]  ;;  %v964_v32 = vshrl.u32 %v3341_v52, 16  ;;  %v967_v35 = vshll.u32 %v3341_v52, 16 }
  0x3d   : > { %v3344_v27 = vld [vmem:[#allocation2 + $0x38] sm:$0xf]  ;;  %2832 = vmatprep.mubr.msk.bf16.mxu1 %vm559_vm4, %v2462_v12  ;;  %377 = vst [vmem:[#allocation2 + $0x14] sm:$0x1] %v376_v8  ;;  %v387_v40 = vld [vmem:[#allocation2 + $0x24] sm:$0x1]  ;;  %v984_v16 = vor.u32 %v3307_v2, %v3303_v50  ;;  %v3391_v8 = vcombine.low %v3206_v21, %v3238_v54  ;;  %v998_v2 = vor.u32 %v3322_v56, %v3311_v47 }
  0x3e   : > { %v382_v19 = vsel %vm3316_vm6, %v222_v18, %v381_v30  ;;  %v388_v36 = vsel %vm3316_vm6, %v230_v59, %v387_v40  ;;  %v1006_v20 = vshrl.u32 %v3217_v34, 16  ;;  %v1009_v46 = vshll.u32 %v3217_v34, 16  ;;  %v3378_v1 = vld [vmem:[#allocation2 + $0x4] sm:$0x1]  ;;  %v393_v18 = vld [vmem:[#allocation2 + $0x2c] sm:$0x1] }
  0x3f   : > { %v3358_v41 = vld [vmem:[#allocation2 + $0x40] sm:$0xf]  ;;  %v3366_v49 = vrot.slane %v1104_v11, 4  ;;  %v3368_v53 = vrot.slane %v1107_v44, 5  ;;  %383 = vst [vmem:[#allocation2 + $0x1c] sm:$0x1] %v382_v19  ;;  %v2474_v59 = vcombine.low %v3341_v52, %v3192_v9 }
  0x40   : > { %v2459_v55 = vcombine.low %v3344_v27, %v3358_v41  ;;  %v3372_v58 = vld [vmem:[#allocation2 + $0x78] sm:$0xf]  ;;  %389 = vst [vmem:[#allocation2 + $0x24] sm:$0x1] %v388_v36  ;;  %4200 = vst [vmem:[#allocation9_spill] sm:$0xff] %v3378_v1  ;;  %v1020_v33 = vshrl.u32 %v3227_v45, 16 }
  0x41   : > { %v3374_v62 = vld [vmem:[#allocation2 + $0x80] sm:$0xf]  ;;  %v1023_v7 = vshll.u32 %v3227_v45, 16  ;;  %v966_v44 = vrot.slane %v964_v32, 4  ;;  %v969_v12 = vrot.slane %v967_v35, 5  ;;  %v1008_v30 = vrot.slane %v1006_v20, 4 }
  0x42   : > { %2825 = vmatmul.mubr.msk.bf16.gmra.mxu0 %vm559_vm4, %v2459_v55  ;;  %v2463_v11 = vcombine.low %v3372_v58, %v3374_v62  ;;  %v1011_v40 = vrot.slane %v1009_v46, 5  ;;  %v238_v19 = vrot.slane %v3182_v61, 4  ;;  %v2476_v32 = vcombine.low %v3227_v45, %v3283_v43  ;;  %v3397_v35 = vld [vmem:[#allocation2 + $0xc] sm:$0x1]  ;;  %v399_v21 = vld [vmem:[#allocation2 + $0x34] sm:$0x1] }
  0x43   : > { %2860 = vmatprep.mubr.msk.bf16.mxu0 %vm559_vm4, %v3356_v37  ;;  %4201 = vst [vmem:[#allocation10_spill] sm:$0xff] %v3397_v35  ;;  %v973_v50 = vshll.u32 %v3378_v1, 16  ;;  %v246_v36 = vrot.slane %v3203_v15, 4  ;;  %vm960_vm7 = vsmask.f32 3328  ;;  %v1022_v20 = vrot.slane %v1020_v33, 4 }
  0x44   : > { %2833 = vmatmul.mubr.msk.bf16.gmra.mxu1 %vm559_vm4, %v2463_v11  ;;  %v1025_v61 = vrot.slane %v1023_v7, 5  ;;  %v394_v46 = vsel %vm3316_vm6, %v238_v19, %v393_v18  ;;  %v3408_v55 = vcombine.low %v3289_v3, %v3344_v27  ;;  %vm961_vm8 = vsmask.f32 7440  ;;  %v3412_v47 = vld [vmem:[#allocation2 + $0x14] sm:$0x1]  ;;  %v3026_v15 = vld [vmem:[%s4178_s1 + $0x40] sm:$0xff]  }
  0x45   : > { %2840 = vmatprep.mubr.msk.bf16.mxu1 %vm559_vm4, %v2474_v59  ;;  %v970_v11 = vor.u32 %v969_v12, %v966_v44  ;;  %v3410_v17 = vrot.slane %v984_v16, 4  ;;  %395 = vst [vmem:[#allocation2 + $0x2c] sm:$0x1] %v394_v46  ;;  %v987_v56 = vshll.u32 %v3397_v35, 16  ;;  %v1012_v59 = vor.u32 %v1011_v40, %v1008_v30  ;;  %v3025_v44 = vld [vmem:[%s4178_s1 + $0x10] sm:$0xff]   ;;  %vm3479_vm9 = vmor %vm960_vm7, %vm961_vm8 }
  0x46   : > { %v1034_v33 = vshrl.u32 %v3283_v43, 16  ;;  %v400_v7 = vsel %vm3316_vm6, %v246_v36, %v399_v21  ;;  %v3424_v12 = vrot.slane %v973_v50, 5  ;;  %v3426_v16 = vld [vmem:[#allocation2 + $0x1c] sm:$0x1]  ;;  %v1037_v18 = vshll.u32 %v3283_v43, 16 }
  0x47   : > { %401 = vst [vmem:[#allocation2 + $0x34] sm:$0x1] %v400_v7  ;;  %v405_v19 = vld [vmem:[#allocation2 + $0x3c] sm:$0x1]  ;;  %v3435_v36 = vcombine.low %v3246_v60, %v3297_v63  ;;  %v3437_v21 = vld [vmem:[#allocation2 + $0x24] sm:$0x1]  ;;  %v1026_v46 = vor.u32 %v1025_v61, %v1022_v20  ;;  %v3444_v7 = vcombine.low %v3358_v41, %v3200_v13 }
  0x48   : > { %4202 = vst [vmem:[#allocation11_spill] sm:$0xff] %v3437_v21  ;;  %v1001_v50 = vshll.u32 %v3412_v47, 16  ;;  %v1048_v5 = vshrl.u32 %v3289_v3, 16  ;;  %v3446_v30 = vrot.slane %v970_v11, 4  ;;  %v999_v40 = vrot.slane %v998_v2, 4 }
  0x49   : > { %v254_v28 = vrot.slane %v3251_v0, 4  ;;  %v989_v20 = vrot.slane %v987_v56, 5  ;;  %v1013_v61 = vrot.slane %v1012_v59, 4  ;;  %v1015_v13 = vshll.u32 %v3426_v16, 16  ;;  %v411_v11 = vld [vmem:[#allocation2 + $0x44] sm:$0x1] }
  0x4a   : > { %2861 = vmatmul.mubr.msk.bf16.vlgmr.msra.gmra.mxu0 %vm559_vm4, %v2476_v32  ;;  %v1036_v1 = vrot.slane %v1034_v33, 4  ;;  %v3462_v2 = vcombine.low %v3331_v6, %v3372_v58  ;;  %v1029_v0 = vshll.u32 %v3437_v21, 16  ;;  %v1039_v56 = vrot.slane %v1037_v18, 5  ;;  %v417_v33 = vld [vmem:[#allocation2 + $0x4c] sm:$0x1] }
  0x4b   : > { %2897 = vmatpush3.bf16.msra.mxu0 %v3260_v14  ;;  %2864 = vmatprep.mubr.msk.bf16.mxu0 %vm559_vm4, %v3408_v55  ;;  %v3468_v14 = vld [vmem:[%s4178_s1 + $0x78] sm:$0xff]   ;;  %v406_v59 = vsel %vm3316_vm6, %v254_v28, %v405_v19  ;;  %v1027_v52 = vrot.slane %v1026_v46, 4  ;;  %v3475_v9 = vrot.slane %v1048_v5, 4  ;;  %v1051_v28 = vshll.u32 %v3289_v3, 16  ;;  %v3493_v21 = vld [vmem:[#allocation2 + $0x88] sm:$0xf] }
  0x4c   : > { %2841 = vmatmul.mubr.msk.bf16.vlgmr.msra.gmra.mxu1 %vm559_vm4, %v3356_v37  ;;  %2898 = vmatprep.subr.bf16.mxu0 %v3026_v15  ;;  %v1003_v37 = vrot.slane %v1001_v50, 5  ;;  %407 = vst [vmem:[#allocation2 + $0x3c] sm:$0x1] %v406_v59  ;;  %v262_v19 = vrot.slane %v3266_v24, 4  ;;  %v423_v50 = vld [vmem:[#allocation2 + $0x54] sm:$0x1]  ;;  %v1040_v24 = vor.u32 %v1039_v56, %v1036_v1 }
  0x4d   : > { %2877 = vmatpush3.bf16.msra.mxu1 %v3274_v4  ;;  %2844 = vmatprep.mubr.msk.bf16.mxu1 %vm559_vm4, %v2476_v32  ;;  %v1062_v4 = vshrl.u32 %v3344_v27, 16  ;;  %v1065_v32 = vshll.u32 %v3344_v27, 16  ;;  %v1017_v5 = vrot.slane %v1015_v13, 5  ;;  %v1076_v46 = vshrl.u32 %v3358_v41, 16  ;;  %v3512_v1 = vld [vmem:[#allocation2 + $0x2c] sm:$0x1] }
  0x4e   : > { %2878 = vmatprep.subr.bf16.mxu1 %v3025_v44  ;;  %v1079_v59 = vshll.u32 %v3358_v41, 16  ;;  %v4205_v35 = vrot.slane %v3149_v25, 4  ;;  %v1031_v3 = vrot.slane %v1029_v0, 5  ;;  %v412_v13 = vsel %vm3316_vm6, %v262_v19, %v411_v11  ;;  %v429_v11 = vld [vmem:[#allocation2 + $0x5c] sm:$0x1] }
  0x4f   : > { %2899 = vmatpush3.bf16.msra.mxu0 %v3026_v15  ;;  %v976_v25 = vsel %vm3479_vm9, %v3446_v30, %v3424_v12  ;;  %v3510_v15 = vsel %vm3479_vm9, %v999_v40, %v1003_v37  ;;  %413 = vst [vmem:[#allocation2 + $0x44] sm:$0x1] %v412_v13  ;;  %v435_v0 = vld [vmem:[#allocation2 + $0x64] sm:$0x1]  ;;  %v1064_v12 = vrot.slane %v1062_v4, 4  ;;  %v1067_v30 = vrot.slane %v1065_v32, 5 }
  0x50   : > { %v418_v43 = vsel %vm3316_vm6, %v4205_v35, %v417_v33  ;;  %2936 = vmatprep.subr.bf16.mxu0 %v3451_v29  ;;  %v3506_v35 = vsel %vm3479_vm9, %v3410_v17, %v989_v20  ;;  %v1053_v17 = vrot.slane %v1051_v28, 5  ;;  %v286_v40 = vrot.slane %v3173_v51, 4  ;;  %v3537_v51 = vld [vmem:[#allocation2 + $0x34] sm:$0x1] }
  0x51   : > { %419 = vst [vmem:[#allocation2 + $0x4c] sm:$0x1] %v418_v43  ;;  %2879 = vmatpush3.bf16.msra.mxu1 %v3025_v44  ;;  %v4206_v43 = vrot.slane %v3151_v26, 4  ;;  %v3528_v20 = vsel %vm3479_vm9, %v1013_v61, %v1017_v5  ;;  %v1078_v56 = vrot.slane %v1076_v46, 4  ;;  %v1081_v33 = vrot.slane %v1079_v59, 5 }
  0x52   : > { %2865 = vmatmul.mubr.msk.bf16.gmra.mxu0 %vm559_vm4, %v3444_v7  ;;  %2916 = vmatprep.subr.bf16.mxu1 %v3468_v14  ;;  %v3533_v37 = vcombine.low %v976_v25, %v3506_v35  ;;  %v3535_v28 = vrot.slane %v1040_v24, 4  ;;  %v430_v4 = vsel %vm3316_vm6, %v286_v40, %v429_v11  ;;  %v294_v32 = vrot.slane %v3179_v57, 4 }
  0x53   : > { %v424_v44 = vsel %vm3316_vm6, %v4206_v43, %v423_v50  ;;  %2868 = vmatprep.mubr.msk.bf16.mxu0 %vm559_vm4, %v3391_v8  ;;  %v3546_v61 = vsel %vm3479_vm9, %v1027_v52, %v1031_v3  ;;  %v3550_v19 = vld [vmem:[#allocation2 + $0x3c] sm:$0x1]  ;;  %431 = vst [vmem:[#allocation2 + $0x5c] sm:$0x1] %v430_v4  ;;  %v1118_v50 = vshrl.u32 %v3238_v54, 16  ;;  %v1121_v5 = vshll.u32 %v3238_v54, 16 }
  0x54   : > { %425 = vst [vmem:[#allocation2 + $0x54] sm:$0x1] %v424_v44  ;;  %2845 = vmatmul.mubr.msk.bf16.gmra.mxu1 %vm559_vm4, %v3408_v55  ;;  %v3556_v57 = vcombine.low %v3510_v15, %v3528_v20  ;;  %v1054_v46 = vor.u32 %v1053_v17, %v3475_v9  ;;  %v436_v3 = vsel %vm3316_vm6, %v294_v32, %v435_v0  ;;  %v441_v52 = vld [vmem:[#allocation2 + $0x6c] sm:$0x1]  ;;  %v1057_v59 = vshll.u32 %v3537_v51, 16 }
  0x55   : > { %2848 = vmatprep.mubr.msk.bf16.mxu1 %vm559_vm4, %v3444_v7  ;;  %v1043_v7 = vshll.u32 %v3512_v1, 16  ;;  %v1068_v24 = vor.u32 %v1067_v30, %v1064_v12  ;;  %v1082_v13 = vor.u32 %v1081_v33, %v1078_v56  ;;  %437 = vst [vmem:[#allocation2 + $0x64] sm:$0x1] %v436_v3  ;;  %v302_v43 = vrot.slane %v3208_v23, 4  ;;  %v447_v44 = vld [vmem:[#allocation2 + $0x74] sm:$0x1] }
  0x56   : > { %v1071_v11 = vshll.u32 %v3550_v19, 16  ;;  %v3567_v40 = vld [vmem:[#allocation2 + $0x44] sm:$0x1]  ;;  %v1132_v9 = vshrl.u32 %v3246_v60, 16  ;;  %v1135_v17 = vshll.u32 %v3246_v60, 16  ;;  %v310_v0 = vrot.slane %v3230_v48, 4 }
  0x57   : > { %v1120_v12 = vrot.slane %v1118_v50, 4  ;;  %v1123_v30 = vrot.slane %v1121_v5, 5  ;;  %v442_v56 = vsel %vm3316_vm6, %v302_v43, %v441_v52  ;;  %v1055_v23 = vrot.slane %v1054_v46, 4 }
  0x58   : > { %v3563_v25 = vld [vmem:[#allocation2 + $0x4c] sm:$0x1]  ;;  %v1085_v33 = vshll.u32 %v3567_v40, 16  ;;  %443 = vst [vmem:[#allocation2 + $0x6c] sm:$0x1] %v442_v56  ;;  %v1146_v32 = vshrl.u32 %v3297_v63, 16  ;;  %v4208_v50 = vor.u32 %v3328_v39, %v3326_v38  ;;  %v4209_v46 = vor.u32 %v3368_v53, %v3366_v49 }
  0x59   : > { %4207 = vst [vmem:[#allocation12_spill] sm:$0xff] %v3563_v25  ;;  %v1099_v4 = vshll.u32 %v3563_v25, 16  ;;  %v1149_v3 = vshll.u32 %v3297_v63, 16  ;;  %vm1708_vm11 = vcmask 1046532   ;;  %v1045_v48 = vrot.slane %v1043_v7, 5 }
  0x5a   : > { %2869 = vmatmul.mubr.msk.bf16.gmra.mxu0 %vm559_vm4, %v3435_v36  ;;  %v1097_v5 = vrot.slane %v4208_v50, 4  ;;  %v1111_v43 = vrot.slane %v4209_v46, 4  ;;  %v448_v56 = vsel %vm3316_vm6, %v310_v0, %v447_v44  ;;  %v1059_v45 = vrot.slane %v1057_v59, 5  ;;  %v3594_v26 = vld [vmem:[#allocation2 + $0x5c] sm:$0x1]  ;;  %vm3660_vm12 = vmor %vm1707_vm10, %vm1708_vm11 }
  0x5b   : > { %2872 = vmatprep.mubr.msk.bf16.mxu0 %vm559_vm4, %v3462_v2  ;;  %v3585_v52 = vld [vmem:[#allocation2 + $0x54] sm:$0x1]  ;;  %v1069_v55 = vrot.slane %v1068_v24, 4  ;;  %v1134_v7 = vrot.slane %v1132_v9, 4  ;;  %v1137_v25 = vrot.slane %v1135_v17, 5  ;;  %v1073_v38 = vrot.slane %v1071_v11, 5 }
  0x5c   : > { %2849 = vmatmul.mubr.msk.bf16.gmra.mxu1 %vm559_vm4, %v3391_v8  ;;  %449 = vst [vmem:[#allocation2 + $0x74] sm:$0x1] %v448_v56  ;;  %v1083_v39 = vrot.slane %v1082_v13, 4  ;;  %v1101_v49 = vrot.slane %v1099_v4, 5  ;;  %v1124_v53 = vor.u32 %v1123_v30, %v1120_v12  ;;  %v1087_v50 = vrot.slane %v1085_v33, 5 }
  0x5d   : > { %2852 = vmatprep.mubr.msk.bf16.mxu1 %vm559_vm4, %v3435_v36  ;;  %v1113_v44 = vshll.u32 %v3585_v52, 16  ;;  %v3599_v0 = vld [vmem:[#allocation2 + $0x64] sm:$0x1]  ;;  %v1148_v8 = vrot.slane %v1146_v32, 4  ;;  %v1151_v59 = vrot.slane %v1149_v3, 5  ;;  %v3604_v24 = vsel %vm3479_vm9, %v3535_v28, %v1045_v48 }
  0x5e   : > { %v1127_v9 = vshll.u32 %v3594_v26, 16  ;;  %v1160_v36 = vshrl.u32 %v3331_v6, 16  ;;  %v1163_v13 = vshll.u32 %v3331_v6, 16  ;;  %v453_v11 = vld [vmem:[#allocation2 + $0x7c] sm:$0x1]  ;;  %v1060_v17 = vsel %vm3479_vm9, %v1055_v23, %v1059_v45 }
  0x5f   : > { %v1138_v4 = vor.u32 %v1137_v25, %v1134_v7  ;;  %v1141_v12 = vshll.u32 %v3599_v0, 16  ;;  %v318_v30 = vrot.slane %v3269_v31, 4  ;;  %v459_v33 = vld [vmem:[#allocation2 + $0x84] sm:$0x1]  ;;  %v3615_v28 = vsel %vm3479_vm9, %v1069_v55, %v1073_v38  ;;  %v3636_v46 = vld [vmem:[#allocation2 + $0x6c] sm:$0x1] }
  0x60   : > { %v3619_v32 = vsel %vm3479_vm9, %v1097_v5, %v1101_v49  ;;  %v1125_v3 = vrot.slane %v1124_v53, 4  ;;  %v326_v48 = vrot.slane %v3281_v42, 4  ;;  %v4210_v45 = vcombine.low %v3374_v62, %v3493_v21 }
  0x61   : > { %v3628_v31 = vsel %vm3479_vm9, %v1083_v39, %v1087_v50  ;;  %v1115_v25 = vrot.slane %v1113_v44, 5  ;;  %v1152_v23 = vor.u32 %v1151_v59, %v1148_v8  ;;  %v454_v55 = vsel %vm3316_vm6, %v318_v30, %v453_v11 }
  0x62   : > { %2873 = vmatmul.mubr.msk.bf16.gmra.mxu0 %vm559_vm4, %v4210_v45  ;;  %v4211_v5 = vcombine.low %v3506_v35, %v3510_v15  ;;  %v1129_v42 = vrot.slane %v1127_v9, 5  ;;  %v1162_v56 = vrot.slane %v1160_v36, 4  ;;  %v1165_v7 = vrot.slane %v1163_v13, 5  ;;  %455 = vst [vmem:[#allocation2 + $0x7c] sm:$0x1] %v454_v55 }
  0x63   : > { %v460_v38 = vsel %vm3316_vm6, %v326_v48, %v459_v33  ;;  %v2534_v39 = vcombine.low %v3528_v20, %v3546_v61  ;;  %v3646_v35 = vcombine.low %v3546_v61, %v3604_v24  ;;  %v1139_v15 = vrot.slane %v1138_v4, 4  ;;  %v3648_v53 = vld [vmem:[#allocation2 + $0x74] sm:$0x1] }
  0x64   : > { %2900 = vmatprep.mubr.msk.bf16.mxu0 %vm559_vm4, %v4211_v5  ;;  %2853 = vmatmul.mubr.msk.bf16.gmra.mxu1 %vm559_vm4, %v3462_v2  ;;  %v1143_v49 = vrot.slane %v1141_v12, 5  ;;  %461 = vst [vmem:[#allocation2 + $0x84] sm:$0x1] %v460_v38  ;;  %v2535_v22 = vcombine.low %v3604_v24, %v1060_v17  ;;  %v3654_v50 = vcombine.low %v1060_v17, %v3615_v28  ;;  %v1174_v2 = vshrl.u32 %v3372_v58, 16  ;;  %v3031_v17 = vld [vmem:[%s4178_s1 + $0x20] sm:$0xff]   ;;  %v4219_v5 = vld [vmem:[#allocation11_spill] sm:$0xff] }
  0x65   : > { %2880 = vmatprep.mubr.msk.bf16.mxu1 %vm559_vm4, %v3533_v37  ;;  %v1177_v20 = vshll.u32 %v3372_v58, 16  ;;  %v2536_v44 = vcombine.low %v3615_v28, %v3628_v31  ;;  %v3668_v37 = vcombine.low %v3628_v31, %v3619_v32  ;;  %v3672_v8 = vsel %vm3479_vm9, %v1111_v43, %v1115_v25 }
  0x66   : > { %v1155_v59 = vshll.u32 %v3636_v46, 16  ;;  %v3677_v24 = vsel %vm3479_vm9, %v1125_v3, %v1129_v42  ;;  %v1153_v9 = vrot.slane %v1152_v23, 4  ;;  %v1166_v36 = vor.u32 %v1165_v7, %v1162_v56  ;;  %v4220_v56 = vld [vmem:[#allocation6_spill] sm:$0xff] }
  0x67   : > { %v1169_v13 = vshll.u32 %v3648_v53, 16  ;;  %v3682_v11 = vsel %vm3479_vm9, %v1139_v15, %v1143_v49  ;;  %v1366_v43 = vshrl.u32 %v3374_v62, 16  ;;  %v4214_v4 = vrot.slane %v3412_v47, 5 }
  0x68   : > { %v4215_v12 = vrot.slane %v3194_v10, 9  ;;  %v4216_v33 = vrot.slane %v3426_v16, 5  ;;  %v4217_v3 = vrot.slane %v3217_v34, 9  ;;  %v1176_v45 = vrot.slane %v1174_v2, 4  ;;  %v3030_v10 = vld [vmem:[%s4178_s1 + $0x70] sm:$0xff]   ;;  %v4218_v34 = vld [vmem:[#allocation5_spill] sm:$0xff] }
  0x69   : > { %v1179_v25 = vrot.slane %v1177_v20, 5  ;;  %v1369_v23 = vshll.u32 %v3374_v62, 16  ;;  %v1157_v16 = vrot.slane %v1155_v59, 5  ;;  %v2570_v55 = vrot.slane %v4218_v34, 9  ;;  %v3725_v59 = vld [vmem:[%s4178_s1 + $0x88] sm:$0xff]  }
  0x6a   : > { %v3694_v30 = vsel %vm3660_vm12, %v4215_v12, %v4214_v4  ;;  %v3702_v48 = vsel %vm3660_vm12, %v4217_v3, %v4216_v33  ;;  %2901 = vmatmul.mubr.msk.bf16.vlgmr.msra.gmra.mxu0 %vm559_vm4, %v2534_v39  ;;  %v1728_v42 = vrot.slane %v4219_v5, 5  ;;  %v2571_v7 = vrot.slane %v4220_v56, 9  ;;  %v4221_v39 = vld [vmem:[#allocation7_spill] sm:$0xff]  ;;  %v4224_v56 = vld [vmem:[#allocation8_spill] sm:$0xff] }
  0x6b   : > { %v3707_v47 = vcombine.low %v3694_v30, %v3702_v48  ;;  %2937 = vmatpush3.bf16.msra.mxu0 %v3451_v29  ;;  %2904 = vmatprep.mubr.msk.bf16.mxu0 %vm559_vm4, %v2535_v22  ;;  %v1167_v38 = vrot.slane %v1166_v36, 4  ;;  %v1171_v15 = vrot.slane %v1169_v13, 5  ;;  %v1732_v49 = vrot.slane %v3512_v1, 5 }
  0x6c   : > { %v2572_v2 = vrot.slane %v4221_v39, 9  ;;  %2881 = vmatmul.mubr.msk.bf16.vlgmr.msra.gmra.mxu1 %vm559_vm4, %v3556_v57  ;;  %2938 = vmatprep.subr.bf16.mxu0 %v3031_v17  ;;  %v1368_v20 = vrot.slane %v1366_v43, 4  ;;  %v3729_v29 = vsel %vm3660_vm12, %v2570_v55, %v1728_v42  ;;  %v1736_v22 = vrot.slane %v3537_v51, 5  ;;  %v4222_v55 = vld [vmem:[#allocation3_spill] sm:$0xff] }
  0x6d   : > { %v2573_v1 = vrot.slane %v3344_v27, 9  ;;  %2917 = vmatpush3.bf16.msra.mxu1 %v3468_v14  ;;  %2884 = vmatprep.mubr.msk.bf16.mxu1 %vm559_vm4, %v3646_v35  ;;  %v1371_v36 = vrot.slane %v1369_v23, 5  ;;  %v3738_v13 = vsel %vm3660_vm12, %v2571_v7, %v1732_v49  ;;  %v2610_v43 = vcombine.low %v3702_v48, %v3729_v29  ;;  %v493_v27 = vld [vmem:[#allocation2 + $0x7c] sm:$0x1] }
  0x6e   : > { %v1740_v4 = vrot.slane %v3550_v19, 5  ;;  %v2537_v51 = vcombine.low %v3619_v32, %v3672_v8  ;;  %2918 = vmatprep.subr.bf16.mxu1 %v3030_v10  ;;  %v1180_v12 = vor.u32 %v1179_v25, %v1176_v45  ;;  %v3748_v14 = vld [vmem:[%s4178_s1 + $0x58] sm:$0xff]   ;;  %v3752_v33 = vcombine.low %v3729_v29, %v3738_v13  ;;  %v495_v25 = vld [vmem:[#allocation2 + $0x84] sm:$0x1] }
  0x6f   : > { %v3756_v3 = vsel %vm3660_vm12, %v2572_v2, %v1736_v22  ;;  %v3760_v19 = vcombine.low %v3672_v8, %v3677_v24  ;;  %2939 = vmatpush3.bf16.msra.mxu0 %v3031_v17  ;;  %v1158_v32 = vsel %vm3479_vm9, %v1153_v9, %v1157_v16  ;;  %v3766_v45 = vsel %vm3479_vm9, %v1167_v38, %v1171_v15  ;;  %v4223_v8 = vld [vmem:[#allocation10_spill] sm:$0xff]  ;;  %v4225_v38 = vld [vmem:[#allocation9_spill] sm:$0xff] }
  0x70   : > { %v3770_v23 = vsel %vm3660_vm12, %v2573_v1, %v1740_v4  ;;  %v2538_v34 = vcombine.low %v3677_v24, %v3682_v11  ;;  %v2567_v5 = vrot.slane %v4222_v55, 9  ;;  %v1716_v42 = vrot.slane %v4223_v8, 5  ;;  %2976 = vmatprep.subr.bf16.mxu0 %v3725_v59 }
  0x71   : > { %v3779_v9 = vcombine.low %v3756_v3, %v3770_v23  ;;  %2919 = vmatpush3.bf16.msra.mxu1 %v3030_v10  ;;  %v1183_v17 = vshll.u32 %v493_v27, 16  ;;  %v1372_v16 = vor.u32 %v1371_v36, %v1368_v20  ;;  %v2566_v7 = vrot.slane %v4224_v56, 9 }
  0x72   : > { %v1712_v15 = vrot.slane %v4225_v38, 5  ;;  %2905 = vmatmul.mubr.msk.bf16.gmra.mxu0 %vm559_vm4, %v2536_v44  ;;  %v2539_v24 = vcombine.low %v1158_v32, %v3766_v45  ;;  %v1181_v49 = vrot.slane %v1180_v12, 4  ;;  %v1375_v39 = vshll.u32 %v495_v25, 16  ;;  %2956 = vmatprep.subr.bf16.mxu1 %v3748_v14 }
  0x73   : > { %v2578_v2 = vrot.slane %v3246_v60, 9  ;;  %2908 = vmatprep.mubr.msk.bf16.mxu0 %vm559_vm4, %v2537_v51  ;;  %v2574_v10 = vrot.slane %v3358_v41, 9  ;;  %v1744_v20 = vrot.slane %v3567_v40, 5  ;;  %v1760_v22 = vrot.slane %v3599_v0, 5 }
  0x74   : > { %v2579_v28 = vrot.slane %v3297_v63, 9  ;;  %2885 = vmatmul.mubr.msk.bf16.gmra.mxu1 %vm559_vm4, %v3654_v50  ;;  %v3799_v31 = vsel %vm3660_vm12, %v2567_v5, %v1716_v42  ;;  %v2577_v44 = vrot.slane %v3238_v54, 9  ;;  %v1756_v60 = vrot.slane %v3594_v26, 5 }
  0x75   : > { %v1764_v1 = vrot.slane %v3636_v46, 5  ;;  %2888 = vmatprep.mubr.msk.bf16.mxu1 %vm559_vm4, %v3668_v37  ;;  %v1185_v41 = vrot.slane %v1183_v17, 5  ;;  %v1373_v40 = vrot.slane %v1372_v16, 4  ;;  %v3808_v63 = vsel %vm3660_vm12, %v2578_v2, %v1760_v22  ;;  %v4227_v2 = vld [vmem:[#allocation12_spill] sm:$0xff] }
  0x76   : > { %v2580_v0 = vrot.slane %v3331_v6, 9  ;;  %v1377_v36 = vrot.slane %v1375_v39, 5  ;;  %v1768_v54 = vrot.slane %v3648_v53, 5  ;;  %v2581_v26 = vrot.slane %v3372_v58, 9 }
  0x77   : > { %v3813_v4 = vsel %vm3660_vm12, %v2579_v28, %v1764_v1  ;;  %v3819_v46 = vsel %vm3660_vm12, %v2574_v10, %v1744_v20  ;;  %v1772_v12 = vrot.slane %v493_v27, 5  ;;  %v2609_v6 = vcombine.low %v3799_v31, %v3694_v30  ;;  %v3035_v20 = vld [vmem:[%s4178_s1 + $0x80] sm:$0xff]  }
  0x78   : > { %v3823_v51 = vcombine.low %v3808_v63, %v3813_v4  ;;  %v3829_v55 = vsel %vm3660_vm12, %v2577_v44, %v1756_v60  ;;  %v3833_v53 = vsel %vm3660_vm12, %v2580_v0, %v1768_v54  ;;  %v2611_v58 = vcombine.low %v3738_v13, %v3756_v3  ;;  %v3036_v44 = vld [vmem:[#allocation2 + $0x50] sm:$0xf] }
  0x79   : > { %v2612_v5 = vcombine.low %v3770_v23, %v3819_v46  ;;  %v2517_v8 = vcombine.low %v3682_v11, %v1158_v32  ;;  %v3842_v27 = vsel %vm3660_vm12, %v2581_v26, %v1772_v12  ;;  %v2614_v42 = vcombine.low %v3829_v55, %v3808_v63 }
  0x7a   : > { %v2615_v17 = vcombine.low %v3813_v4, %v3833_v53  ;;  %2909 = vmatmul.mubr.msk.bf16.gmra.mxu0 %vm559_vm4, %v2538_v34  ;;  %v3851_v16 = vcombine.low %v3833_v53, %v3842_v27  ;;  %v2604_v56 = vrot.slane %v3374_v62, 9  ;;  %v1955_v38 = vrot.slane %v495_v25, 5 }
  0x7b   : > { %2912 = vmatprep.mubr.msk.bf16.mxu0 %vm559_vm4, %v2539_v24  ;;  %v1186_v11 = vsel %vm3479_vm9, %v1181_v49, %v1185_v41  ;;  %v1378_v32 = vsel %vm3479_vm9, %v1373_v40, %v1377_v36  ;;  %v1713_v34 = vsel %vm3660_vm12, %v2566_v7, %v1712_v15  ;;  %v4226_v7 = vld [vmem:[#allocation4_spill] sm:$0xff]  ;;  %v1748_v10 = vrot.slane %v4227_v2, 5  ;;  %v497_v40 = vld [vmem:[#allocation2 + $0x8c] sm:$0x1] }
  0x7c   : > { %2889 = vmatmul.mubr.msk.bf16.gmra.mxu1 %vm559_vm4, %v3760_v19  ;;  %v3865_v39 = vsel %vm3660_vm12, %v2604_v56, %v1955_v38  ;;  %v2540_v25 = vcombine.low %v1186_v11, %v1378_v32  ;;  %v2586_v24 = vcombine.low %v1713_v34, %v3799_v31  ;;  %v2518_v49 = vcombine.low %v3766_v45, %v1186_v11  ;;  %v3034_v45 = vld [vmem:[%s4178_s1 + $0x50] sm:$0xff]  }
  0x7d   : > { %2892 = vmatprep.mubr.msk.bf16.mxu1 %vm559_vm4, %v2517_v8  ;;  %v2616_v62 = vcombine.low %v3842_v27, %v3865_v39  ;;  %v2575_v15 = vrot.slane %v4226_v7, 9  ;;  %v1543_v22 = vshrl.u32 %v3493_v21, 16  ;;  %v1546_v28 = vshll.u32 %v3493_v21, 16 }
  0x7e   : > { %v2576_v60 = vrot.slane %v3036_v44, 9  ;;  %v2627_v30 = vrot.slane %v3493_v21, 9  ;;  %v2123_v48 = vrot.slane %v497_v40, 5 }
  0x7f   : > { %v1545_v1 = vrot.slane %v1543_v22, 4  ;;  %v1548_v41 = vrot.slane %v1546_v28, 5 }
  0x82   : > { %2913 = vmatmul.mubr.msk.bf16.gmra.mxu0 %vm559_vm4, %v2540_v25 }
  0x83   : > { %2940 = vmatprep.mubr.msk.bf16.mxu0 %vm559_vm4, %v2586_v24 }
  0x84   : > { %2893 = vmatmul.mubr.msk.bf16.gmra.mxu1 %vm559_vm4, %v2518_v49 }
  0x85   : > { %2920 = vmatprep.mubr.msk.bf16.mxu1 %vm559_vm4, %v3556_v57  ;;  %v1749_v57 = vsel %vm3660_vm12, %v2575_v15, %v1748_v10 }
  0x8a   : > { %2941 = vmatmul.mubr.msk.bf16.vlgmr.msra.gmra.mxu0 %vm559_vm4, %v3707_v47 }
  0x8b   : > { %2977 = vmatpush3.bf16.msra.mxu0 %v3725_v59  ;;  %2944 = vmatprep.mubr.msk.bf16.mxu0 %vm559_vm4, %v3752_v33  ;;  %v2590_v59 = vcombine.low %v3819_v46, %v1749_v57 }
  0x8c   : > { %2921 = vmatmul.mubr.msk.bf16.vlgmr.msra.gmra.mxu1 %vm559_vm4, %v3646_v35  ;;  %2978 = vmatprep.subr.bf16.mxu0 %v3035_v20  ;;  %v1752_v35 = vrot.slane %v3585_v52, 5  ;;  %v1549_v52 = vor.u32 %v1548_v41, %v1545_v1 }
  0x8d   : > { %2957 = vmatpush3.bf16.msra.mxu1 %v3748_v14  ;;  %2924 = vmatprep.mubr.msk.bf16.mxu1 %vm559_vm4, %v3654_v50  ;;  %v1552_v14 = vshll.u32 %v497_v40, 16 }
  0x8e   : > { %2958 = vmatprep.subr.bf16.mxu1 %v3034_v45  ;;  %v1753_v50 = vsel %vm3660_vm12, %v2576_v60, %v1752_v35  ;;  %v1550_v36 = vrot.slane %v1549_v52, 4 }
  0x8f   : > { %2979 = vmatpush3.bf16.msra.mxu0 %v3035_v20  ;;  %v2591_v0 = vcombine.low %v1753_v50, %v3829_v55  ;;  %v1554_v54 = vrot.slane %v1552_v14, 5  ;;  %v2613_v18 = vcombine.low %v1749_v57, %v1753_v50 }
  0x91   : > { %2959 = vmatpush3.bf16.msra.mxu1 %v3034_v45 }
  0x92   : > { %2945 = vmatmul.mubr.msk.bf16.gmra.mxu0 %vm559_vm4, %v3779_v9 }
  0x93   : > { %2948 = vmatprep.mubr.msk.bf16.mxu0 %vm559_vm4, %v2590_v59 }
  0x94   : > { %2925 = vmatmul.mubr.msk.bf16.gmra.mxu1 %vm559_vm4, %v3668_v37  ;;  %v1555_v37 = vsel %vm3479_vm9, %v1550_v36, %v1554_v54 }
  0x95   : > { %2928 = vmatprep.mubr.msk.bf16.mxu1 %vm559_vm4, %v3760_v19  ;;  %v2555_v26 = vcombine.low %v1378_v32, %v1555_v37 }
  0x9a   : > { %2949 = vmatmul.mubr.msk.bf16.gmra.mxu0 %vm559_vm4, %v2591_v0 }
  0x9b   : > { %2952 = vmatprep.mubr.msk.bf16.mxu0 %vm559_vm4, %v3823_v51 }
  0x9c   : > { %2929 = vmatmul.mubr.msk.bf16.gmra.mxu1 %vm559_vm4, %v2517_v8 }
  0x9d   : > { %2932 = vmatprep.mubr.msk.bf16.mxu1 %vm559_vm4, %v2518_v49 }
  0xa2   : > { %2953 = vmatmul.mubr.msk.bf16.gmra.mxu0 %vm559_vm4, %v3851_v16 }
  0xa3   : > { %2980 = vmatprep.mubr.msk.bf16.mxu0 %vm559_vm4, %v3707_v47  ;;  %v2124_v47 = vsel %vm3660_vm12, %v2627_v30, %v2123_v48 }
  0xa4   : > { %2933 = vmatmul.mubr.msk.bf16.gmra.mxu1 %vm559_vm4, %v2555_v26  ;;  %v2632_v21 = vcombine.low %v3865_v39, %v2124_v47 }
  0xa5   : > { %2960 = vmatprep.mubr.msk.bf16.mxu1 %vm559_vm4, %v2609_v6 }
  0xaa   : > { %2981 = vmatmul.mubr.msk.bf16.vlgmr.msra.gmra.mxu0 %vm559_vm4, %v3752_v33 }
  0xab   : > { %2984 = vmatprep.mubr.msk.bf16.mxu0 %vm559_vm4, %v3779_v9 }
  0xac   : > { %2961 = vmatmul.mubr.msk.bf16.vlgmr.msra.gmra.mxu1 %vm559_vm4, %v2610_v43 }
  0xad   : > { %2964 = vmatprep.mubr.msk.bf16.mxu1 %vm559_vm4, %v2611_v58 }
  0xb2   : > { %2985 = vmatmul.mubr.msk.bf16.gmra.mxu0 %vm559_vm4, %v2590_v59 }
  0xb3   : > { %2988 = vmatprep.mubr.msk.bf16.mxu0 %vm559_vm4, %v2591_v0 }
  0xb4   : > { %2965 = vmatmul.mubr.msk.bf16.gmra.mxu1 %vm559_vm4, %v2612_v5 }
  0xb5   : > { %2968 = vmatprep.mubr.msk.bf16.mxu1 %vm559_vm4, %v2613_v18 }
  0xba   : > { %2989 = vmatmul.mubr.msk.bf16.gmra.mxu0 %vm559_vm4, %v3823_v51 }
  0xbb   : > { %2992 = vmatprep.mubr.msk.bf16.mxu0 %vm559_vm4, %v3851_v16 }
  0xbc   : > { %2969 = vmatmul.mubr.msk.bf16.gmra.mxu1 %vm559_vm4, %v2614_v42 }
  0xbd   : > { %2972 = vmatprep.mubr.msk.bf16.mxu1 %vm559_vm4, %v2615_v17 }
  0xc2   : > { %2993 = vmatmul.mubr.msk.bf16.gmra.mxu0 %vm559_vm4, %v2632_v21 }
  0xc4   : > { %2973 = vmatmul.mubr.msk.bf16.gmra.mxu1 %vm559_vm4, %v2616_v62 }
  0xf1   : > { %v2822_v61 = vpop.f32.mrf.mxu0 }
  0xf3   : > { %v618_v13 = vpop.f32.mrf.mxu0 }
  0xf4   : > { %v2830_v29 = vpop.f32.mrf.mxu1 }
  0xf5   : > { %v2823_v33 = vpop.f32.mrf.mxu0 }
  0xf6   : > { %v650_v43 = vpop.f32.mrf.mxu1 }
  0xf7   : > { %v621_v19 = vpop.f32.mrf.mxu0 }
  0xf8   : > { %v2831_v3 = vpop.f32.mrf.mxu1 }
  0xfa   : > { %v653_v23 = vpop.f32.mrf.mxu1 }
 0x102   : > { %v2826_v9 = vpop.f32.mrf.mxu0 }
 0x104   : > { %v2834_v31 = vpop.f32.mrf.mxu1  ;;  %v634_v63 = vpop.f32.mrf.mxu0 }
 0x106   : > { %v666_v4 = vpop.f32.mrf.mxu1  ;;  %v2827_v46 = vpop.f32.mrf.mxu0 }
 0x108   : > { %v2835_v51 = vpop.f32.mrf.mxu1  ;;  %v637_v12 = vpop.f32.mrf.mxu0 }
 0x10a   : > { %v3967_v6 = vpop.f32.mrf.mxu1  ;;  %v2862_v55 = vpop.f32.mrf.mxu0 }
 0x10c   : > { %v2842_v53 = vpop.f32.mrf.mxu1  ;;  %v881_v58 = vpop.f32.mrf.mxu0 }
 0x10d   : > { %v770_v5 = vadd.f32 %v2842_v53, %v2822_v61 }
 0x10e   : > { %v761_v8 = vpop.f32.mrf.mxu1  ;;  %v2863_v27 = vpop.f32.mrf.mxu0 }
 0x10f   : > { %v3969_v42 = vadd.f32 %v2862_v55, %v770_v5  ;;  %v762_v17 = vadd.f32 %v761_v8, %v618_v13 }
 0x110   : > { %v2843_v16 = vpop.f32.mrf.mxu1  ;;  %v884_v56 = vpop.f32.mrf.mxu0 }
 0x111   : > { %v3971_v38 = vadd.f32 %v881_v58, %v762_v17  ;;  %v773_v11 = vadd.f32 %v2843_v16, %v2823_v33 }
 0x112   : > { %v764_v32 = vpop.f32.mrf.mxu1  ;;  %v2866_v34 = vpop.f32.mrf.mxu0 }
 0x113   : > { %v3973_v39 = vadd.f32 %v2863_v27, %v773_v11  ;;  %v765_v62 = vadd.f32 %v764_v32, %v621_v19 }
 0x114   : > { %v2846_v25 = vpop.f32.mrf.mxu1  ;;  %v897_v24 = vpop.f32.mrf.mxu0 }
 0x115   : > { %v3975_v49 = vadd.f32 %v884_v56, %v765_v62  ;;  %v786_v7 = vadd.f32 %v2846_v25, %v2826_v9 }
 0x116   : > { %v777_v15 = vpop.f32.mrf.mxu1  ;;  %v2867_v2 = vpop.f32.mrf.mxu0 }
 0x117   : > { %v3977_v10 = vadd.f32 %v2866_v34, %v786_v7  ;;  %v778_v20 = vadd.f32 %v777_v15, %v634_v63 }
 0x118   : > { %v2847_v45 = vpop.f32.mrf.mxu1  ;;  %v900_v57 = vpop.f32.mrf.mxu0 }
 0x119   : > { %v3979_v22 = vadd.f32 %v897_v24, %v778_v20  ;;  %v789_v28 = vadd.f32 %v2847_v45, %v2827_v46 }
 0x11a   : > { %v780_v59 = vpop.f32.mrf.mxu1  ;;  %v2870_v44 = vpop.f32.mrf.mxu0 }
 0x11b   : > { %v3981_v60 = vadd.f32 %v2867_v2, %v789_v28  ;;  %v781_v35 = vadd.f32 %v780_v59, %v637_v12 }
 0x11c   : > { %v2850_v1 = vpop.f32.mrf.mxu1  ;;  %v913_v41 = vpop.f32.mrf.mxu0 }
 0x11d   : > { %v3983_v40 = vadd.f32 %v900_v57, %v781_v35  ;;  %v802_v50 = vadd.f32 %v2850_v1, %v2830_v29 }
 0x11e   : > { %v793_v52 = vpop.f32.mrf.mxu1  ;;  %v2871_v14 = vpop.f32.mrf.mxu0 }
 0x11f   : > { %v3985_v0 = vadd.f32 %v2870_v44, %v802_v50  ;;  %v794_v36 = vadd.f32 %v793_v52, %v650_v43 }
 0x120   : > { %v2851_v54 = vpop.f32.mrf.mxu1  ;;  %v916_v37 = vpop.f32.mrf.mxu0 }
 0x121   : > { %v3987_v26 = vadd.f32 %v913_v41, %v794_v36  ;;  %v805_v18 = vadd.f32 %v2851_v54, %v2831_v3 }
 0x122   : > { %v796_v30 = vpop.f32.mrf.mxu1  ;;  %v2874_v48 = vpop.f32.mrf.mxu0 }
 0x123   : > { %v3989_v47 = vadd.f32 %v2871_v14, %v805_v18  ;;  %v797_v21 = vadd.f32 %v796_v30, %v653_v23 }
 0x124   : > { %v2854_v61 = vpop.f32.mrf.mxu1  ;;  %v929_v13 = vpop.f32.mrf.mxu0 }
 0x125   : > { %v3991_v33 = vadd.f32 %v916_v37, %v797_v21  ;;  %v818_v29 = vadd.f32 %v2854_v61, %v2834_v31 }
 0x126   : > { %v809_v19 = vpop.f32.mrf.mxu1  ;;  %v2875_v9 = vpop.f32.mrf.mxu0 }
 0x127   : > { %v3993_v63 = vadd.f32 %v2874_v48, %v818_v29  ;;  %v810_v43 = vadd.f32 %v809_v19, %v666_v4 }
 0x128   : > { %v2855_v46 = vpop.f32.mrf.mxu1  ;;  %v932_v12 = vpop.f32.mrf.mxu0 }
 0x129   : > { %v3995_v55 = vadd.f32 %v929_v13, %v810_v43  ;;  %v821_v3 = vadd.f32 %v2855_v46, %v2835_v51 }
 0x12a   : > { %v812_v53 = vpop.f32.mrf.mxu1  ;;  %v3997_v58 = vpop.f32.mrf.mxu0 }
 0x12b   : > { %v3999_v5 = vadd.f32 %v2875_v9, %v821_v3  ;;  %v813_v23 = vadd.f32 %v812_v53, %v3967_v6 }
 0x12c   : > { %v2882_v8 = vpop.f32.mrf.mxu1  ;;  %v4002_v27 = vpop.f32.mrf.mxu0 }
 0x12d   : > { %v4004_v31 = vadd.f32 %v932_v12, %v813_v23 }
 0x12e   : > { %v1286_v17 = vpop.f32.mrf.mxu1  ;;  %v4006_v16 = vpop.f32.mrf.mxu0 }
 0x12f   : > { %4228 = vst [vmem:[#allocation5_spill] sm:$0xff] %v4004_v31 }
 0x130   : > { %v2883_v4 = vpop.f32.mrf.mxu1  ;;  %v4008_v56 = vpop.f32.mrf.mxu0 }
 0x132   : > { %v1289_v11 = vpop.f32.mrf.mxu1  ;;  %v4010_v51 = vpop.f32.mrf.mxu0 }
 0x134   : > { %v2886_v32 = vpop.f32.mrf.mxu1  ;;  %v4012_v34 = vpop.f32.mrf.mxu0 }
 0x136   : > { %v1302_v62 = vpop.f32.mrf.mxu1  ;;  %v4014_v25 = vpop.f32.mrf.mxu0 }
 0x138   : > { %v2887_v6 = vpop.f32.mrf.mxu1  ;;  %v4016_v24 = vpop.f32.mrf.mxu0 }
 0x13a   : > { %v4018_v7 = vpop.f32.mrf.mxu1  ;;  %v4020_v15 = vpop.f32.mrf.mxu0 }
 0x13c   : > { %v4022_v2 = vpop.f32.mrf.mxu1  ;;  %v4024_v20 = vpop.f32.mrf.mxu0 }
 0x13e   : > { %v4026_v45 = vpop.f32.mrf.mxu1  ;;  %v4028_v57 = vpop.f32.mrf.mxu0 }
 0x140   : > { %v4030_v28 = vpop.f32.mrf.mxu1  ;;  %v4032_v59 = vpop.f32.mrf.mxu0 }
 0x142   : > { %v4034_v44 = vpop.f32.mrf.mxu1  ;;  %v4036_v35 = vpop.f32.mrf.mxu0 }
 0x143   : > { %4229 = vst [vmem:[#allocation11_spill] sm:$0xff] %v4036_v35 }
 0x144   : > { %v4038_v1 = vpop.f32.mrf.mxu1  ;;  %v4040_v41 = vpop.f32.mrf.mxu0 }
 0x145   : > { %4230 = vst [vmem:[#allocation6_spill] sm:$0xff] %v4040_v41 }
 0x146   : > { %v4042_v50 = vpop.f32.mrf.mxu1  ;;  %v4044_v52 = vpop.f32.mrf.mxu0 }
 0x147   : > { %4231 = vst [vmem:[#allocation7_spill] sm:$0xff] %v4044_v52 }
 0x148   : > { %v4046_v14 = vpop.f32.mrf.mxu1  ;;  %v4048_v36 = vpop.f32.mrf.mxu0 }
 0x149   : > { %4232 = vst [vmem:[#allocation3_spill] sm:$0xff] %v4048_v36 }
 0x14a   : > { %v4050_v54 = vpop.f32.mrf.mxu1  ;;  %v2942_v37 = vpop.f32.mrf.mxu0 }
 0x14b   : > { %4233 = vst [vmem:[#allocation10_spill] sm:$0xff] %v4050_v54 }
 0x14c   : > { %v2922_v18 = vpop.f32.mrf.mxu1  ;;  %v1873_v30 = vpop.f32.mrf.mxu0 }
 0x14e   : > { %v1612_v48 = vpop.f32.mrf.mxu1  ;;  %v2943_v21 = vpop.f32.mrf.mxu0 }
 0x150   : > { %v2923_v61 = vpop.f32.mrf.mxu1  ;;  %v4052_v13 = vpop.f32.mrf.mxu0 }
 0x152   : > { %v1615_v29 = vpop.f32.mrf.mxu1  ;;  %v4054_v19 = vpop.f32.mrf.mxu0 }
 0x153   : > { %4234 = vst [vmem:[#allocation8_spill] sm:$0xff] %v4054_v19 }
 0x154   : > { %v2926_v9 = vpop.f32.mrf.mxu1  ;;  %v4056_v43 = vpop.f32.mrf.mxu0 }
 0x155   : > { %4235 = vst [vmem:[#allocation9_spill] sm:$0xff] %v4056_v43 }
 0x156   : > { %v1628_v46 = vpop.f32.mrf.mxu1  ;;  %v4058_v12 = vpop.f32.mrf.mxu0 }
 0x157   : > { %4236 = vst [vmem:[#allocation4_spill] sm:$0xff] %v4058_v12  ;;  %v1351_v12 = vadd.f32 %v2882_v8, %v3969_v42  ;;  %v1350_v8 = vadd.f32 %v1289_v11, %v3975_v49  ;;  %v1354_v11 = vadd.f32 %v4018_v7, %v3983_v40 }
 0x158   : > { %v2927_v3 = vpop.f32.mrf.mxu1  ;;  %v4060_v53 = vpop.f32.mrf.mxu0 }
 0x159   : > { %4237 = vst [vmem:[#allocation12_spill] sm:$0xff] %v4060_v53 }
 0x15a   : > { %v4062_v23 = vpop.f32.mrf.mxu1  ;;  %v4064_v36 = vpop.f32.mrf.mxu0 }
 0x15b   : > { %4238 = vst [vmem:[#allocation13_spill] sm:$0xff] %v4062_v23  ;;  %4239 = vst [vmem:[#allocation14_spill] sm:$0xff] %v4064_v36  ;;  %v1349_v36 = vadd.f32 %v1286_v17, %v3971_v38 }
 0x15c   : > { %v4066_v54 = vpop.f32.mrf.mxu1  ;;  %v4068_v31 = vpop.f32.mrf.mxu0 }
 0x15d   : > { %4240 = vst [vmem:[#allocation15_spill] sm:$0xff] %v4066_v54  ;;  %4241 = vst [vmem:[#allocation16_spill] sm:$0xff] %v4068_v31  ;;  %v1528_v31 = vadd.f32 %v3997_v58, %v1351_v12  ;;  %v1526_v42 = vadd.f32 %v4002_v27, %v1349_v36  ;;  %v1527_v27 = vadd.f32 %v4008_v56, %v1350_v8 }
 0x15e   : > { %v4070_v52 = vpop.f32.mrf.mxu1  ;;  %v4072_v41 = vpop.f32.mrf.mxu0  ;;  %v1358_v56 = vadd.f32 %v4034_v44, %v3991_v33 }
 0x15f   : > { %4242 = vst [vmem:[#allocation17_spill] sm:$0xff] %v4070_v52  ;;  %4243 = vst [vmem:[#allocation18_spill] sm:$0xff] %v4072_v41  ;;  %v1352_v41 = vadd.f32 %v2883_v4, %v3973_v39  ;;  %v1675_v58 = vadd.f32 %v1612_v48, %v1526_v42  ;;  %v1353_v39 = vadd.f32 %v1302_v62, %v3979_v22 }
 0x160   : > { %v4074_v35 = vpop.f32.mrf.mxu1  ;;  %v4076_v43 = vpop.f32.mrf.mxu0  ;;  %v1356_v4 = vadd.f32 %v2887_v6, %v3981_v60  ;;  %v1357_v22 = vadd.f32 %v4026_v45, %v3987_v26  ;;  %v1360_v62 = vadd.f32 %v4030_v28, %v3989_v47  ;;  %v1676_v7 = vadd.f32 %v1615_v29, %v1527_v27 }
 0x161   : > { %4244 = vst [vmem:[#allocation19_spill] sm:$0xff] %v4074_v35  ;;  %4245 = vst [vmem:[#allocation20_spill] sm:$0xff] %v4076_v43  ;;  %v1677_v43 = vadd.f32 %v2922_v18, %v1528_v31  ;;  %v1936_v6 = vadd.f32 %v1873_v30, %v1675_v58 }
 0x162   : > { %v4079_v19 = vpop.f32.mrf.mxu1  ;;  %v4081_v53 = vpop.f32.mrf.mxu0  ;;  %v1533_v40 = vadd.f32 %v4014_v25, %v1356_v4  ;;  %v1534_v30 = vadd.f32 %v4024_v20, %v1357_v22  ;;  %v1535_v25 = vadd.f32 %v4032_v59, %v1358_v56  ;;  %v4249_v20 = vld [vmem:[#allocation8_spill] sm:$0xff]  ;;  %v4250_v59 = vld [vmem:[#allocation9_spill] sm:$0xff] }
 0x163   : > { %4246 = vst [vmem:[#allocation21_spill] sm:$0xff] %v4081_v53  ;;  %v1355_v53 = vadd.f32 %v2886_v32, %v3977_v10  ;;  %v1938_v49 = vadd.f32 %v2942_v37, %v1677_v43  ;;  %v1531_v37 = vadd.f32 %v4016_v24, %v1354_v11  ;;  %v1937_v24 = vadd.f32 %v4052_v13, %v1676_v7 }
 0x164   : > { %v4084_v23 = vpop.f32.mrf.mxu1  ;;  %v4086_v54 = vpop.f32.mrf.mxu0  ;;  %v1682_v18 = vadd.f32 %v2927_v3, %v1533_v40  ;;  %v4256_v40 = vld [vmem:[#allocation6_spill] sm:$0xff] }
 0x165   : > { %4247 = vst [vmem:[#allocation22_spill] sm:$0xff] %v4086_v54  ;;  %v1529_v54 = vadd.f32 %v4006_v16, %v1352_v41  ;;  %v1532_v10 = vadd.f32 %v4010_v51, %v1355_v53  ;;  %v1359_v16 = vadd.f32 %v4022_v2, %v3985_v0  ;;  %v1530_v51 = vadd.f32 %v4012_v34, %v1353_v39  ;;  %v4251_v53 = vld [vmem:[#allocation4_spill] sm:$0xff]  ;;  %v4253_v39 = vld [vmem:[#allocation15_spill] sm:$0xff] }
 0x166   : > { %v4090_v52 = vpop.f32.mrf.mxu1  ;;  %v4092_v35 = vpop.f32.mrf.mxu0  ;;  %v1537_v34 = vadd.f32 %v4028_v57, %v1360_v62  ;;  %v1943_v42 = vadd.f32 %v4251_v53, %v1682_v18  ;;  %v1684_v53 = vadd.f32 %v4079_v19, %v1535_v25 }
 0x167   : > { %4248 = vst [vmem:[#allocation23_spill] sm:$0xff] %v4092_v35  ;;  %v1678_v31 = vadd.f32 %v2923_v61, %v1529_v54  ;;  %v1681_v54 = vadd.f32 %v2926_v9, %v1532_v10  ;;  %v1536_v47 = vadd.f32 %v4020_v15, %v1359_v16  ;;  %v1679_v28 = vadd.f32 %v1628_v46, %v1530_v51 }
 0x168   : > { %v4097_v38 = vpop.f32.mrf.mxu1  ;;  %v4099_v17 = vpop.f32.mrf.mxu0  ;;  %v1364_v9 = vadd.f32 %v4046_v14, %v3999_v5  ;;  %v4254_v14 = vld [vmem:[#allocation17_spill] sm:$0xff] }
 0x169   : > { %v1939_v2 = vadd.f32 %v2943_v21, %v1678_v31  ;;  %v1363_v21 = vadd.f32 %v4038_v1, %v3993_v63  ;;  %v1942_v43 = vadd.f32 %v4249_v20, %v1681_v54  ;;  %v1940_v3 = vadd.f32 %v4250_v59, %v1679_v28  ;;  %v4258_v54 = vld [vmem:[#allocation12_spill] sm:$0xff]  ;;  %v4264_v59 = vld [vmem:[#allocation18_spill] sm:$0xff] }
 0x16a   : > { %v4104_v12 = vpop.f32.mrf.mxu1  ;;  %v2982_v35 = vpop.f32.mrf.mxu0  ;;  %v1685_v5 = vadd.f32 %v4253_v39, %v1536_v47  ;;  %v1683_v4 = vadd.f32 %v4254_v14, %v1534_v30  ;;  %v4260_v30 = vld [vmem:[#allocation5_spill] sm:$0xff] }
 0x16c   : > { %v2962_v32 = vpop.f32.mrf.mxu1  ;;  %v2181_v60 = vpop.f32.mrf.mxu0 }
 0x16d   : > { %v2106_v41 = vadd.f32 %v2962_v32, %v1938_v49 }
 0x16e   : > { %v2041_v36 = vpop.f32.mrf.mxu1  ;;  %v2983_v0 = vpop.f32.mrf.mxu0 }
 0x16f   : > { %v2246_v26 = vadd.f32 %v2982_v35, %v2106_v41  ;;  %v2104_v45 = vadd.f32 %v2041_v36, %v1936_v6  ;;  %v1361_v35 = vadd.f32 %v4042_v50, %v3995_v55  ;;  %v4252_v50 = vld [vmem:[#allocation13_spill] sm:$0xff]  ;;  %v4255_v41 = vld [vmem:[#allocation11_spill] sm:$0xff] }
 0x170   : > { %v2963_v33 = vpop.f32.mrf.mxu1  ;;  %v2184_v44 = vpop.f32.mrf.mxu0  ;;  %v1680_v13 = vadd.f32 %v4252_v50, %v1531_v37  ;;  %v1540_v51 = vadd.f32 %v4255_v41, %v1363_v21  ;;  %v4257_v36 = vld [vmem:[#allocation19_spill] sm:$0xff]  ;;  %v4262_v21 = vld [vmem:[#allocation14_spill] sm:$0xff] }
 0x171   : > { %v2107_v48 = vadd.f32 %v2963_v33, %v1939_v2  ;;  %v2244_v15 = vadd.f32 %v2181_v60, %v2104_v45  ;;  %v2278_v57 = vmul.f32 0.1, %v2246_v26  ;;  %vm2262_vm13 = vcmp.ge.f32.partialorder %v2246_v26, 0.0  ;;  %v4259_v33 = vld [vmem:[#allocation7_spill] sm:$0xff] }
 0x172   : > { %v2044_v61 = vpop.f32.mrf.mxu1  ;;  %v2986_v29 = vpop.f32.mrf.mxu0  ;;  %v1538_v7 = vadd.f32 %v4256_v40, %v1361_v35 }
 0x173   : > { %v2247_v46 = vadd.f32 %v2983_v0, %v2107_v48  ;;  %v2105_v63 = vadd.f32 %v2044_v61, %v1937_v24  ;;  %v2276_v27 = vmul.f32 0.1, %v2244_v15  ;;  %v2294_v11 = vsel %vm2262_vm13, %v2246_v26, %v2278_v57  ;;  %v4261_v48 = vld [vmem:[#allocation10_spill] sm:$0xff] }
 0x174   : > { %v2966_v55 = vpop.f32.mrf.mxu1  ;;  %v2197_v1 = vpop.f32.mrf.mxu0  ;;  %vm2260_vm15 = vcmp.ge.f32.partialorder %v2244_v15, 0.0  ;;  %v1686_v0 = vadd.f32 %v4257_v36, %v1537_v34  ;;  %v1941_v26 = vadd.f32 %v4258_v54, %v1680_v13  ;;  %v1362_v24 = vadd.f32 %v4261_v48, %v4260_v30 }
 0x175   : > { %vm2263_vm14 = vcmp.ge.f32.partialorder %v2247_v46, 0.0  ;;  %v2279_v8 = vmul.f32 0.1, %v2247_v46  ;;  %v2110_v58 = vadd.f32 %v2966_v55, %v1942_v43  ;;  %v2245_v49 = vadd.f32 %v2184_v44, %v2105_v63 }
 0x176   : > { %v2057_v31 = vpop.f32.mrf.mxu1  ;;  %v2987_v10 = vpop.f32.mrf.mxu0  ;;  %v2292_v45 = vsel %vm2260_vm15, %v2244_v15, %v2276_v27  ;;  %v1541_v44 = vadd.f32 %v4259_v33, %v1364_v9  ;;  %v1946_v61 = vadd.f32 %v4262_v21, %v1685_v5  ;;  %v1689_v13 = vadd.f32 %v4084_v23, %v1540_v51 }
 0x177   : > { %v2295_v16 = vsel %vm2263_vm14, %v2247_v46, %v2279_v8  ;;  %v2108_v22 = vadd.f32 %v2057_v31, %v1940_v3  ;;  %vm2261_vm0 = vcmp.ge.f32.partialorder %v2245_v49, 0.0  ;;  %v2277_v60 = vmul.f32 0.1, %v2245_v49 }
 0x178   : > { %v2687_v32 = vpack.c.bf16 %v2295_v16, %v2294_v11  ;;  %v2250_v62 = vadd.f32 %v2986_v29, %v2110_v58  ;;  %v2967_v56 = vpop.f32.mrf.mxu1  ;;  %v2200_v6 = vpop.f32.mrf.mxu0  ;;  %v4263_v29 = vld [vmem:[#allocation16_spill] sm:$0xff]  ;;  %v1947_v3 = vadd.f32 %v4264_v59, %v1686_v0  ;;  %v1690_v41 = vadd.f32 %v4097_v38, %v1541_v44  ;;  %v4269_v38 = vld [vmem:[#allocation23_spill] sm:$0xff] }
 0x179   : > { %v2111_v2 = vadd.f32 %v2967_v56, %v1943_v42  ;;  %v2293_v37 = vsel %vm2261_vm0, %v2245_v49, %v2277_v60  ;;  %v2248_v47 = vadd.f32 %v2197_v1, %v2108_v22  ;;  %v1944_v34 = vadd.f32 %v4263_v29, %v1683_v4  ;;  %v4265_v4 = vld [vmem:[#allocation3_spill] sm:$0xff]  ;;  %v4266_v49 = vld [vmem:[#allocation20_spill] sm:$0xff]  ;;  %v4267_v56 = vld [vmem:[#allocation21_spill] sm:$0xff] }
 0x17a   : > { %2719 = vst [vmem:[%s4143_s28 + $0x8] sm:$0xff] %v2687_v32   ;;  %v2060_v28 = vpop.f32.mrf.mxu1  ;;  %v2990_v18 = vpop.f32.mrf.mxu0  ;;  %v2682_v35 = vpack.c.bf16 %v2293_v37, %v2292_v45  ;;  %v2282_v20 = vmul.f32 0.1, %v2250_v62  ;;  %vm2266_vm1 = vcmp.ge.f32.partialorder %v2250_v62, 0.0  ;;  %v1539_v27 = vadd.f32 %v4265_v4, %v1362_v24 }
 0x17b   : > { %v2251_v43 = vadd.f32 %v2987_v10, %v2111_v2  ;;  %v2109_v57 = vadd.f32 %v2060_v28, %v1941_v26  ;;  %v2280_v42 = vmul.f32 0.1, %v2248_v47  ;;  %vm2264_vm3 = vcmp.ge.f32.partialorder %v2248_v47, 0.0 }
 0x17c   : > { %v2970_v15 = vpop.f32.mrf.mxu1  ;;  %v2213_v46 = vpop.f32.mrf.mxu0  ;;  %2683 = vst [vmem:[%s4143_s28] sm:$0xff] %v2682_v35   ;;  %v2298_v39 = vsel %vm2266_vm1, %v2250_v62, %v2282_v20  ;;  %v1945_v31 = vadd.f32 %v4266_v49, %v1684_v53  ;;  %v1687_v10 = vadd.f32 %v4090_v52, %v1538_v7  ;;  %v4268_v52 = vld [vmem:[#allocation22_spill] sm:$0xff]  ;;  %v1688_v54 = vadd.f32 %v4104_v12, %v1539_v27 }
 0x17d   : > { %v2114_v9 = vadd.f32 %v2970_v15, %v1946_v61  ;;  %vm2267_vm2 = vcmp.ge.f32.partialorder %v2251_v43, 0.0  ;;  %v2283_v63 = vmul.f32 0.1, %v2251_v43  ;;  %v2249_v55 = vadd.f32 %v2200_v6, %v2109_v57 }
 0x17e   : > { %v2073_v1 = vpop.f32.mrf.mxu1  ;;  %v2991_v50 = vpop.f32.mrf.mxu0  ;;  %v2296_v16 = vsel %vm2264_vm3, %v2248_v47, %v2280_v42  ;;  %v1950_v6 = vadd.f32 %v4267_v56, %v1689_v13  ;;  %v1948_v7 = vadd.f32 %v4268_v52, %v1687_v10  ;;  %v1951_v33 = vadd.f32 %v4269_v38, %v1690_v41 }
 0x17f   : > { %v2254_v8 = vadd.f32 %v2990_v18, %v2114_v9  ;;  %v2112_v58 = vadd.f32 %v2073_v1, %v1944_v34  ;;  %v2299_v5 = vsel %vm2267_vm2, %v2251_v43, %v2283_v63  ;;  %vm2265_vm4 = vcmp.ge.f32.partialorder %v2249_v55, 0.0 }
 0x180   : > { %v2281_v14 = vmul.f32 0.1, %v2249_v55  ;;  %v2971_v19 = vpop.f32.mrf.mxu1  ;;  %v2216_v25 = vpop.f32.mrf.mxu0  ;;  %v2697_v11 = vpack.c.bf16 %v2299_v5, %v2298_v39  ;;  %v1949_v61 = vadd.f32 %v4099_v17, %v1688_v54 }
 0x181   : > { %v2252_v23 = vadd.f32 %v2213_v46, %v2112_v58  ;;  %v2115_v32 = vadd.f32 %v2971_v19, %v1947_v3  ;;  %v2286_v40 = vmul.f32 0.1, %v2254_v8  ;;  %vm2270_vm5 = vcmp.ge.f32.partialorder %v2254_v8, 0.0 }
 0x182   : > { %v2297_v22 = vsel %vm2265_vm4, %v2249_v55, %v2281_v14  ;;  %v2076_v60 = vpop.f32.mrf.mxu1  ;;  %v2994_v62 = vpop.f32.mrf.mxu0  ;;  %2721 = vst [vmem:[%s4143_s28 + $0x18] sm:$0xff] %v2697_v11  }
 0x183   : > { %v2692_v51 = vpack.c.bf16 %v2297_v22, %v2296_v16  ;;  %v2255_v36 = vadd.f32 %v2991_v50, %v2115_v32  ;;  %v2113_v0 = vadd.f32 %v2076_v60, %v1945_v31  ;;  %v2284_v37 = vmul.f32 0.1, %v2252_v23 }
 0x184   : > { %v2974_v2 = vpop.f32.mrf.mxu1  ;;  %v2229_v45 = vpop.f32.mrf.mxu0  ;;  %v2302_v44 = vsel %vm2270_vm5, %v2254_v8, %v2286_v40  ;;  %vm2268_vm7 = vcmp.ge.f32.partialorder %v2252_v23, 0.0 }
 0x185   : > { %2720 = vst [vmem:[%s4143_s28 + $0x10] sm:$0xff] %v2692_v51   ;;  %v2118_v26 = vadd.f32 %v2974_v2, %v1950_v6  ;;  %vm2271_vm6 = vcmp.ge.f32.partialorder %v2255_v36, 0.0  ;;  %v2287_v47 = vmul.f32 0.1, %v2255_v36  ;;  %v2253_v28 = vadd.f32 %v2216_v25, %v2113_v0 }
 0x186   : > { %v2089_v18 = vpop.f32.mrf.mxu1  ;;  %v2995_v29 = vpop.f32.mrf.mxu0  ;;  %v2300_v34 = vsel %vm2268_vm7, %v2252_v23, %v2284_v37 }
 0x187   : > { %v2116_v30 = vadd.f32 %v2089_v18, %v1948_v7  ;;  %v2303_v48 = vsel %vm2271_vm6, %v2255_v36, %v2287_v47  ;;  %vm2269_vm8 = vcmp.ge.f32.partialorder %v2253_v28, 0.0  ;;  %v2285_v24 = vmul.f32 0.1, %v2253_v28 }
 0x188   : > { %v2258_v21 = vadd.f32 %v2994_v62, %v2118_v26  ;;  %v2975_v12 = vpop.f32.mrf.mxu1  ;;  %v2707_v35 = vpack.c.bf16 %v2303_v48, %v2302_v44  ;;  %v2232_v9 = vpop.f32.mrf.mxu0 }
 0x189   : > { %v2301_v20 = vsel %vm2269_vm8, %v2253_v28, %v2285_v24  ;;  %v2256_v43 = vadd.f32 %v2229_v45, %v2116_v30  ;;  %v2119_v57 = vadd.f32 %v2975_v12, %v1951_v33 }
 0x18a   : > { %v2092_v15 = vpop.f32.mrf.mxu1  ;;  %2723 = vst [vmem:[%s4143_s28 + $0x28] sm:$0xff] %v2707_v35   ;;  %v2702_v46 = vpack.c.bf16 %v2301_v20, %v2300_v34  ;;  %v2290_v59 = vmul.f32 0.1, %v2258_v21  ;;  %vm2274_vm9 = vcmp.ge.f32.partialorder %v2258_v21, 0.0 }
 0x18b   : > { %v2259_v3 = vadd.f32 %v2995_v29, %v2119_v57  ;;  %v2117_v53 = vadd.f32 %v2092_v15, %v1949_v61  ;;  %v2288_v42 = vmul.f32 0.1, %v2256_v43  ;;  %vm2272_vm11 = vcmp.ge.f32.partialorder %v2256_v43, 0.0 }
 0x18c   : > { %2722 = vst [vmem:[%s4143_s28 + $0x20] sm:$0xff] %v2702_v46   ;;  %v2306_v55 = vsel %vm2274_vm9, %v2258_v21, %v2290_v59 }
 0x18d   : > { %vm2275_vm10 = vcmp.ge.f32.partialorder %v2259_v3, 0.0  ;;  %v2291_v17 = vmul.f32 0.1, %v2259_v3  ;;  %v2257_v63 = vadd.f32 %v2232_v9, %v2117_v53  ;;  %v2304_v8 = vsel %vm2272_vm11, %v2256_v43, %v2288_v42 }
 0x18f   : > { %v2307_v1 = vsel %vm2275_vm10, %v2259_v3, %v2291_v17  ;;  %vm2273_vm12 = vcmp.ge.f32.partialorder %v2257_v63, 0.0  ;;  %v2289_v50 = vmul.f32 0.1, %v2257_v63 }
 0x190   : > { %v2717_v13 = vpack.c.bf16 %v2307_v1, %v2306_v55 }
 0x191   : > { %v2305_v58 = vsel %vm2273_vm12, %v2257_v63, %v2289_v50 }
 0x192   : > { %2725 = vst [vmem:[%s4143_s28 + $0x38] sm:$0xff] %v2717_v13   ;;  %v2712_v39 = vpack.c.bf16 %v2305_v58, %v2304_v8 }
 0x194   : > { %2724 = vst [vmem:[%s4143_s28 + $0x30] sm:$0xff] %v2712_v39  }
 0x195 PF: > { %s12_s9 = sadd.s32 1, %s3043_s9  }
 0x196   : > { %p9_p4 = scmp.ge.s32.totalorder %s12_s9, 4  }
 0x198   :  { %11 = sbr.rel (!%p9_p4) target bundleno = 1 (0x1), region = 67 }

</bundles_post_ra>
